<compile_context>
chip_gen: v7x
topology: tpu7x:2x2x1
jax: 0.10.0
libtpu: 0.0.40
codegen_flags: <defaults>
</compile_context>

<pallas_src>
import jax
import jax.numpy as jnp
from jax import lax
from jax.experimental import pallas as pl
from jax.experimental.pallas import tpu as pltpu

# Full-precision f32 matmuls everywhere (kernel, packing and reference) so the correctness check
# can be tight (~1e-5).
jax.config.update("jax_default_matmul_precision", "highest")

_VMEM = pl.BlockSpec(memory_space=pltpu.MemorySpace.VMEM)
_HP = lax.Precision.HIGHEST


# --------------------------------------------------------------------------------------------- #
# Fused kernel: whole forward pass, one invocation, everything VMEM-resident.
# --------------------------------------------------------------------------------------------- #
def _fused_forward_kernel(x_ref, w1_ref, b1_ref, wz_ref, wa_ref, c0_ref,
                          gamma_ref, beta_ref, out_ref):
    # x_ref  : (B, 2N)   [x_real_flat | x_imag_flat], N = C*L, flat feature index = c*L + l
    # w1_ref : (N, 3N)   banded-dense conv3|conv5|conv9 (real branch), sine period pre-folded
    # b1_ref : (1, 3N)   period*bias + phase pre-folded
    # wz_ref : (2N, 2C)  permuted + complex-blocked + real/imag-interleaved cross_channel_fc
    # wa_ref : (3N, 2C)  scale*alpha * (conv_final_banded @ wz)   (conv_final folded into FC)
    # c0_ref : (1, 2C)   alpha * (conv_final_bias_flat @ wz)
    # gamma/beta : (1, 2C)  BatchNorm1d affine params (interleaved real/imag features)
    # out_ref: (B, 2C)
    x = x_ref[...]                                   # (B, 2N)
    n = w1_ref.shape[0]                              # N = C*L
    xr = x[:, :n]                                    # real half feeds the conv stack

    # Stage 1 (MXU + EUP): conv3/conv5/conv9 ('same'-padded, channel-concatenated) as ONE
    # banded-dense matmul with the sine activation (act_two_real) fused in the epilogue.
    a = jnp.sin(jnp.dot(xr, w1_ref[...], precision=_HP,
                        preferred_element_type=jnp.float32) + b1_ref[...])      # (B, 3N)

    # Stage 2 (MXU): conv_final + residual + complex linear, collapsed into two narrow matmuls:
    #   y = (x + alpha*(scale*a @ W2 + b2)) @ Wblk  ==  x @ Wz + a @ Wa + c0
    y = (jnp.dot(x, wz_ref[...], precision=_HP, preferred_element_type=jnp.float32)
         + jnp.dot(a, wa_ref[...], precision=_HP, preferred_element_type=jnp.float32)
         + c0_ref[...])                                                          # (B, 2C)

    # Training-mode BatchNorm1d over the batch (biased variance, eps=1e-5).
    # TODO(synk): BatchNorm running_mean/running_var buffers are not updated or returned.
    mean = jnp.mean(y, axis=0, keepdims=True)
    var = jnp.mean(jnp.square(y - mean), axis=0, keepdims=True)
    out_ref[...] = (y - mean) * lax.rsqrt(var + 1e-5) * gamma_ref[...] + beta_ref[...]


# --------------------------------------------------------------------------------------------- #
# One-time parameter packing (wrapper-side, outside the kernel).
# --------------------------------------------------------------------------------------------- #
def _conv1d_as_banded_dense(w, L):
    """'same'-padded Conv1d (cross-correlation) as a dense matrix.

    w: (Cout, Cin, K), K odd.  Returns M of shape (Cin*L, Cout*L) such that for an input of
    shape (Cin, L) flattened channel-major (index c*L + m), y_flat = x_flat @ M is the conv
    output flattened the same way (index o*L + l).  Padding / tap structure live in M's zeros.
    """
    Cout, Cin, K = w.shape
    p = (K - 1) // 2
    m = jnp.arange(L)[:, None]                        # input position
    l = jnp.arange(L)[None, :]                        # output position
    k = m - l + p                                     # tap index
    valid = (k >= 0) & (k < K)
    g = jnp.take(w, jnp.clip(k, 0, K - 1), axis=2)    # (Cout, Cin, L, L)
    g = jnp.where(valid[None, None, :, :], g, 0.0)
    return g.transpose(1, 2, 0, 3).reshape(Cin * L, Cout * L)


def prepare_fused_params(params, L, C):
    N = C * L
    s2 = params["sine2"]
    alpha = params["alpha"]

    # Stage 1: conv3 | conv5 | conv9 (real branch only; the imaginary branch is dead code).
    # Sine period/phase are folded in so the kernel just does sin(x@w1 + b1).
    w1 = jnp.concatenate([_conv1d_as_banded_dense(params[n]["w_real"], L)
                          for n in ("conv3", "conv5", "conv9")], axis=1)            # (N, 3N)
    b1 = jnp.concatenate([jnp.repeat(params[n]["b_real"], L)
                          for n in ("conv3", "conv5", "conv9")])[None, :]           # (1, 3N)
    w1 = s2["period"] * w1
    b1 = s2["period"] * b1 + s2["phase"]

    # conv_final real & imag stacked along the output-channel axis (both see the real path).
    pf = params["conv_final"]
    wf = jnp.concatenate([pf["w_real"], pf["w_imag"]], axis=0)                      # (2C, 3C, 3)
    bf = jnp.concatenate([pf["b_real"], pf["b_imag"]])                              # (2C,)
    w2 = _conv1d_as_banded_dense(wf, L)                                             # (3N, 2N)
    b2 = jnp.repeat(bf, L)[None, :]                                                 # (1, 2N)

    # cross_channel_fc: fold the (B,C,L)->(B,L,C) channel-last permutation into the weights,
    # build the complex block structure and interleave the real/imag output columns so the
    # matmul output is directly the BatchNorm input layout.
    def perm(wfc):  # column index l*C+c  ->  column index c*L+l
        return wfc.reshape(-1, L, C).transpose(0, 2, 1).reshape(-1, N)

    wr = perm(params["fc_real_w"])                                                  # (C, N)
    wi = perm(params["fc_imag_w"])                                                  # (C, N)
    top = jnp.stack([wr, wi], axis=-1).transpose(1, 0, 2).reshape(N, 2 * C)
    bot = jnp.stack([-wi, wr], axis=-1).transpose(1, 0, 2).reshape(N, 2 * C)
    wz = jnp.concatenate([top, bot], axis=0)                                        # (2N, 2C)

    # Fold conv_final + residual scale (alpha) + sine scale through the FC, so the kernel never
    # touches the large (3N, 2N) banded matrix:  y = x @ wz + sin(...) @ wa + c0.
    wa = (s2["scale"] * alpha) * jnp.dot(w2, wz, precision=_HP)                     # (3N, 2C)
    c0 = alpha * jnp.dot(b2, wz, precision=_HP)                                     # (1, 2C)

    return dict(w1=w1, b1=b1, wz=wz, wa=wa, c0=c0,
                gamma=params["bn_gamma"].reshape(1, 2 * C),
                beta=params["bn_beta"].reshape(1, 2 * C))


def build_forward(params, L, C):
    """One-time weight packing, then a jitted forward that is a single pallas_call."""
    fp = prepare_fused_params(params, L, C)

    @jax.jit
    def fwd(x, h0):
        del h0                                        # unused in the reference forward
        B = x.shape[0]
        xB = jnp.concatenate([x[..., 0].reshape(B, -1),
                              x[..., 1].reshape(B, -1)], axis=1)                    # (B, 2*C*L)
        out = pl.pallas_call(
            _fused_forward_kernel,
            out_shape=jax.ShapeDtypeStruct((B, 2 * C), jnp.float32),
            in_specs=[_VMEM] * 8,
            out_specs=_VMEM,
        )(xB, fp["w1"], fp["b1"], fp["wz"], fp["wa"], fp["c0"],
          fp["gamma"], fp["beta"])
        return out.reshape(B, C, 2)

    return fwd


# --------------------------------------------------------------------------------------------- #
# Parameter init (deterministic; mirrors the module __init__ shapes)
# --------------------------------------------------------------------------------------------- #
def init_params(key, C, L):
    def dirac(cout, cin, k):
        w = jnp.zeros((cout, cin, k), jnp.float32)
        d = jnp.arange(min(cout, cin))
        return w.at[d, d, k // 2].set(1.0)

    ks = jax.random.split(key, 12)
    params = {}
    ki = 0
    for name, cin, cout, ksz in [("conv3", C, C, 3), ("conv5", C, C, 5),
                                 ("conv9", C, C, 9), ("conv_final", 3 * C, C, 3)]:
        bound = 1.0 / (cin * ksz) ** 0.5
        params[name] = {
            "w_real": dirac(cout, cin, ksz),
            "b_real": jax.random.uniform(ks[ki], (cout,), jnp.float32, -bound, bound),
            "w_imag": dirac(cout, cin, ksz),
            "b_imag": jax.random.uniform(ks[ki + 1], (cout,), jnp.float32, -bound, bound),
        }
        ki += 2
    N = C * L
    bound = 1.0 / N ** 0.5
    params["fc_real_w"] = jax.random.uniform(ks[ki], (C, N), jnp.float32, -bound, bound)
    params["fc_imag_w"] = jax.random.uniform(ks[ki + 1], (C, N), jnp.float32, -bound, bound)
    params["alpha"] = jnp.float32(0.01)
    params["sine2"] = {"scale": jnp.float32(0.001),      # act_two_real (the only live sine)
                       "period": jnp.float32(1.0),
                       "phase": jnp.float32(0.0)}
    params["bn_gamma"] = jnp.ones((1, 2 * C), jnp.float32)
    params["bn_beta"] = jnp.zeros((1, 2 * C), jnp.float32)
    return params


# --------------------------------------------------------------------------------------------- #
# Pure-JAX reference (independent math path: lax.conv + explicit permutes, NO weight folding)
# --------------------------------------------------------------------------------------------- #
def reference_forward(params, x, h0):
    del h0
    B, L, C, _ = x.shape
    x_r_init = x[..., 0].reshape(B, -1)
    x_i_init = x[..., 1].reshape(B, -1)
    xr = x[..., 0].reshape(B, C, L)                   # raw reshape, as in the module

    def conv(xx, w, b):
        pad = (w.shape[2] - 1) // 2
        y = lax.conv_general_dilated(xx, w, window_strides=(1,), padding=[(pad, pad)],
                                     dimension_numbers=("NCH", "OIH", "NCH"), precision=_HP)
        return y + b[None, :, None]

    cr = jnp.concatenate([conv(xr, params[n]["w_real"], params[n]["b_real"])
                          for n in ("conv3", "conv5", "conv9")], axis=1)   # (B, 3C, L)
    s2 = params["sine2"]
    ar = s2["scale"] * jnp.sin(s2["period"] * cr + s2["phase"])
    pf = params["conv_final"]
    fr = conv(ar, pf["w_real"], pf["b_real"])
    fi = conv(ar, pf["w_imag"], pf["b_imag"])         # module passes the real path twice
    alpha = params["alpha"]
    zr = x_r_init + alpha * fr.reshape(B, -1)
    zi = x_i_init + alpha * fi.reshape(B, -1)
    qr = zr.reshape(B, C, L).transpose(0, 2, 1).reshape(B, -1)
    qi = zi.reshape(B, C, L).transpose(0, 2, 1).reshape(B, -1)
    Wr, Wi = params["fc_real_w"], params["fc_imag_w"]
    real = jnp.dot(qr, Wr.T, precision=_HP) - jnp.dot(qi, Wi.T, precision=_HP)
    imag = jnp.dot(qi, Wr.T, precision=_HP) + jnp.dot(qr, Wi.T, precision=_HP)
    out = jnp.stack([real, imag], -1).reshape(B, -1)
    mean = out.mean(0, keepdims=True)
    var = ((out - mean) ** 2).mean(0, keepdims=True)
    out = (out - mean) / jnp.sqrt(var + 1e-5) * params["bn_gamma"] + params["bn_beta"]
    return out.reshape(B, C, 2)


# --------------------------------------------------------------------------------------------- #
if __name__ == "__main__":
    B, L, C = 4, 16, 4            # batch, input_size (seq length), n_channels
    key = jax.random.PRNGKey(0)
    kx, kh, kp = jax.random.split(key, 3)
    x = jax.random.normal(kx, (B, L, C, 2), jnp.float32)
    h0 = jax.random.normal(kh, (B, C), jnp.float32)   # unused by forward (as in the module)
    params = init_params(kp, C, L)

    fwd = build_forward(params, L, C)
    out = jax.block_until_ready(fwd(x, h0))

    ref = reference_forward(params, x, h0)
    assert out.shape == (B, C, 2)
    assert bool(jnp.all(jnp.isfinite(out)))
    # Tight tolerance: both paths use full-precision f32 matmuls; the only difference is the
    # (exact-in-algebra) wrapper-side folding of conv_final through the complex linear, so any
    # layout / indexing error in the fused kernel would show up as an O(1) mismatch.
    assert bool(jnp.allclose(out, ref, rtol=1e-5, atol=3e-5)), \
        "Pallas fused-kernel output mismatch vs JAX reference"
    print("KERNEL_OK")
</pallas_src>

<mosaic_0001>
module attributes {stable_mosaic.version = 11 : i64} {
  func.func @_fused_forward_kernel(%arg0: memref<4x128xf32, #tpu.memory_space<vmem>>, %arg1: memref<64x192xf32, #tpu.memory_space<vmem>>, %arg2: memref<1x192xf32, #tpu.memory_space<vmem>>, %arg3: memref<128x8xf32, #tpu.memory_space<vmem>>, %arg4: memref<192x8xf32, #tpu.memory_space<vmem>>, %arg5: memref<1x8xf32, #tpu.memory_space<vmem>>, %arg6: memref<1x8xf32, #tpu.memory_space<vmem>>, %arg7: memref<1x8xf32, #tpu.memory_space<vmem>>, %arg8: memref<4x8xf32, #tpu.memory_space<vmem>>) attributes {dimension_semantics = [], scalar_prefetch = 0 : i64, scratch_operands = 0 : i64, tpu.core_type = #tpu.core_type<tc>} {
    %c0 = arith.constant 0 : index
    %c0_0 = arith.constant 0 : index
    %0 = vector.load %arg0[%c0, %c0_0] : memref<4x128xf32, #tpu.memory_space<vmem>>, vector<4x128xf32>
    %1 = vector.extract_strided_slice %0 {offsets = [0, 0], sizes = [4, 64], strides = [1, 1]} : vector<4x128xf32> to vector<4x64xf32>
    %c0_1 = arith.constant 0 : index
    %c0_2 = arith.constant 0 : index
    %2 = vector.load %arg1[%c0_1, %c0_2] : memref<64x192xf32, #tpu.memory_space<vmem>>, vector<64x192xf32>
    %cst = arith.constant dense<0.000000e+00> : vector<4x192xf32>
    %3 = tpu.matmul %1, %2, %cst {dimension_numbers = #tpu.dot_dimension_numbers<[1], [0], [0], [1], [0, 0, 1, 1], [], []>, precision = #tpu.contract_precision<fp32>} : vector<4x64xf32>, vector<64x192xf32>, vector<4x192xf32> -> vector<4x192xf32>
    %c0_3 = arith.constant 0 : index
    %c0_4 = arith.constant 0 : index
    %4 = vector.load %arg2[%c0_3, %c0_4] : memref<1x192xf32, #tpu.memory_space<vmem>>, vector<1x192xf32>
    %5 = vector.broadcast %4 : vector<1x192xf32> to vector<4x192xf32>
    %6 = arith.addf %3, %5 : vector<4x192xf32>
    %7 = math.sin %6 : vector<4x192xf32>
    %c0_5 = arith.constant 0 : index
    %c0_6 = arith.constant 0 : index
    %8 = vector.load %arg3[%c0_5, %c0_6] : memref<128x8xf32, #tpu.memory_space<vmem>>, vector<128x8xf32>
    %cst_7 = arith.constant dense<0.000000e+00> : vector<4x8xf32>
    %9 = tpu.matmul %0, %8, %cst_7 {dimension_numbers = #tpu.dot_dimension_numbers<[1], [0], [0], [1], [0, 0, 1, 1], [], []>, precision = #tpu.contract_precision<fp32>} : vector<4x128xf32>, vector<128x8xf32>, vector<4x8xf32> -> vector<4x8xf32>
    %c0_8 = arith.constant 0 : index
    %c0_9 = arith.constant 0 : index
    %10 = vector.load %arg4[%c0_8, %c0_9] : memref<192x8xf32, #tpu.memory_space<vmem>>, vector<192x8xf32>
    %cst_10 = arith.constant dense<0.000000e+00> : vector<4x8xf32>
    %11 = tpu.matmul %7, %10, %cst_10 {dimension_numbers = #tpu.dot_dimension_numbers<[1], [0], [0], [1], [0, 0, 1, 1], [], []>, precision = #tpu.contract_precision<fp32>} : vector<4x192xf32>, vector<192x8xf32>, vector<4x8xf32> -> vector<4x8xf32>
    %12 = arith.addf %9, %11 : vector<4x8xf32>
    %c0_11 = arith.constant 0 : index
    %c0_12 = arith.constant 0 : index
    %13 = vector.load %arg5[%c0_11, %c0_12] : memref<1x8xf32, #tpu.memory_space<vmem>>, vector<1x8xf32>
    %14 = vector.broadcast %13 : vector<1x8xf32> to vector<4x8xf32>
    %15 = arith.addf %12, %14 : vector<4x8xf32>
    %cst_13 = arith.constant dense<0.000000e+00> : vector<8xf32>
    %16 = vector.multi_reduction <add>, %15, %cst_13 [0] : vector<4x8xf32> to vector<8xf32>
    %17 = vector.shape_cast %16 : vector<8xf32> to vector<1x8xf32>
    %cst_14 = arith.constant 4.000000e+00 : f32
    %18 = vector.broadcast %cst_14 : f32 to vector<1x8xf32>
    %19 = arith.divf %17, %18 : vector<1x8xf32>
    %20 = vector.broadcast %19 : vector<1x8xf32> to vector<4x8xf32>
    %21 = arith.subf %15, %20 : vector<4x8xf32>
    %22 = arith.mulf %21, %21 : vector<4x8xf32>
    %cst_15 = arith.constant dense<0.000000e+00> : vector<8xf32>
    %23 = vector.multi_reduction <add>, %22, %cst_15 [0] : vector<4x8xf32> to vector<8xf32>
    %24 = vector.shape_cast %23 : vector<8xf32> to vector<1x8xf32>
    %cst_16 = arith.constant 4.000000e+00 : f32
    %25 = vector.broadcast %cst_16 : f32 to vector<1x8xf32>
    %26 = arith.divf %24, %25 : vector<1x8xf32>
    %27 = vector.broadcast %19 : vector<1x8xf32> to vector<4x8xf32>
    %28 = arith.subf %15, %27 : vector<4x8xf32>
    %cst_17 = arith.constant 9.99999974E-6 : f32
    %29 = vector.broadcast %cst_17 : f32 to vector<1x8xf32>
    %30 = arith.addf %26, %29 : vector<1x8xf32>
    %31 = math.rsqrt %30 : vector<1x8xf32>
    %32 = vector.broadcast %31 : vector<1x8xf32> to vector<4x8xf32>
    %33 = arith.mulf %28, %32 : vector<4x8xf32>
    %c0_18 = arith.constant 0 : index
    %c0_19 = arith.constant 0 : index
    %34 = vector.load %arg6[%c0_18, %c0_19] : memref<1x8xf32, #tpu.memory_space<vmem>>, vector<1x8xf32>
    %35 = vector.broadcast %34 : vector<1x8xf32> to vector<4x8xf32>
    %36 = arith.mulf %33, %35 : vector<4x8xf32>
    %c0_20 = arith.constant 0 : index
    %c0_21 = arith.constant 0 : index
    %37 = vector.load %arg7[%c0_20, %c0_21] : memref<1x8xf32, #tpu.memory_space<vmem>>, vector<1x8xf32>
    %38 = vector.broadcast %37 : vector<1x8xf32> to vector<4x8xf32>
    %39 = arith.addf %36, %38 : vector<4x8xf32>
    %c0_22 = arith.constant 0 : index
    %c0_23 = arith.constant 0 : index
    %40 = vector.load %arg8[%c0_22, %c0_23] : memref<4x8xf32, #tpu.memory_space<vmem>>, vector<4x8xf32>
    tpu.vector_store %arg8[%c0_22, %c0_23], %39 {strides = array<i32>} : memref<4x8xf32, #tpu.memory_space<vmem>>, vector<4x8xf32>,
    return
  }
}

</mosaic_0001>

<bundles_post_ra>
// kernel: squeeze.2
= control target key start
LH: loop header
LB: loop body
LE: loop exit
PB: predicated region body
PF: predicated region fallthrough
CT: control target
= control target key end

     0   :  { %vm6_vm0 = vcmask 1043458   ;;  %s11_s6 = smov 3  ;;  %s14_s7 = smov 12  ;;  %vm8_vm1 = vcmask 31744   ;;  %vm20_vm2 = vcmask 523744   ;;  %vm32_vm3 = vcmask 490944   ;;  %s381_s0 = inlined_call_operand.vmem [shape: f32[4,16,4,1], index: 0, kind: input, shape index: {}]   ;;  %s382_s1 = inlined_call_operand.vmem [shape: f32[4,64], index: 1, kind: output, shape index: {}]  }
   0x1   :  { %v196_v0 = vld [vmem:[%s381_s0 + $0xf] ss:$16 sm:%s11_s6]   ;;  %s35_s12 = smov 3  ;;  %s38_s15 = smov 12  ;;  %vm44_vm4 = vcmask 458144   ;;  %vm56_vm5 = vcmask 425344  }
   0x2   :  { %v197_v1 = vld [vmem:[%s381_s0 + $0xf] ss:$16 sm:%s14_s7]   ;;  %v200_v3 = vld [vmem:[%s381_s0 + $0xd] ss:$16 sm:%s35_s12]   ;;  %s241_s16 = smov 60   ;;  %s23_s19 = smov 3 }
   0x3   :  { %v17_v2 = vsel %vm6_vm0, %v197_v1, %v196_v0  ;;  %v201_v4 = vld [vmem:[%s381_s0 + $0xd] ss:$16 sm:%s38_s15]   ;;  %s26_s20 = smov 12  ;;  %v198_v6 = vld [vmem:[%s381_s0 + $0xe] ss:$16 sm:%s23_s19]   ;;  %s47_s25 = smov 3 }
   0x4   :  { %18 = vrot.lane.b32.xlu0 %v17_v2, %s241_s16  ;;  %v41_v5 = vsel %vm6_vm0, %v201_v4, %v200_v3  ;;  %v199_v7 = vld [vmem:[%s381_s0 + $0xe] ss:$16 sm:%s26_s20]   ;;  %s242_s26 = smov 52   ;;  %s50_s29 = smov 12  ;;  %vm68_vm6 = vcmask 392544   ;;  %vm80_vm7 = vcmask 359744  }
   0x5   :  { %42 = vrot.lane.b32.xlu1 %v41_v5, %s242_s26  ;;  %v29_v8 = vsel %vm6_vm0, %v199_v7, %v198_v6  ;;  %v202_v9 = vld [vmem:[%s381_s0 + $0xc] ss:$16 sm:%s47_s25]   ;;  %s59_s3 = smov 3  ;;  %s62_s4 = smov 12  ;;  %vm92_vm8 = vcmask 326944   ;;  %vm104_vm9 = vcmask 294144  }
   0x6   :  { %v203_v10 = vld [vmem:[%s381_s0 + $0xc] ss:$16 sm:%s50_s29]   ;;  %s243_s5 = smov 56   ;;  %v204_v12 = vld [vmem:[%s381_s0 + $0xb] ss:$16 sm:%s59_s3]   ;;  %s71_s8 = smov 3 }
   0x7   :  { %v53_v11 = vsel %vm6_vm0, %v203_v10, %v202_v9  ;;  %v205_v13 = vld [vmem:[%s381_s0 + $0xb] ss:$16 sm:%s62_s4]   ;;  %v206_v14 = vld [vmem:[%s381_s0 + $0xa] ss:$16 sm:%s71_s8]   ;;  %s74_s13 = smov 12  ;;  %s244_s14 = smov 48  }
   0x8   :  { %30 = vrot.lane.b32.xlu0 %v29_v8, %s243_s5  ;;  %v65_v15 = vsel %vm6_vm0, %v205_v13, %v204_v12  ;;  %v207_v16 = vld [vmem:[%s381_s0 + $0xa] ss:$16 sm:%s74_s13]   ;;  %s83_s17 = smov 3  ;;  %s86_s18 = smov 12  ;;  %vm116_vm10 = vcmask 261344   ;;  %vm128_vm11 = vcmask 228544  }
   0x9   :  { %54 = vrot.lane.b32.xlu1 %v53_v11, %s244_s14  ;;  %v77_v17 = vsel %vm6_vm0, %v207_v16, %v206_v14  ;;  %v208_v18 = vld [vmem:[%s381_s0 + $0x9] ss:$16 sm:%s83_s17]   ;;  %s95_s23 = smov 3  ;;  %s245_s24 = smov 44   ;;  %vm140_vm12 = vcmask 195744   ;;  %vm152_vm13 = vcmask 162944  }
   0xa   :  { %v209_v19 = vld [vmem:[%s381_s0 + $0x9] ss:$16 sm:%s86_s18]   ;;  %v210_v20 = vld [vmem:[%s381_s0 + $0x8] ss:$16 sm:%s95_s23]   ;;  %s98_s27 = smov 12  ;;  %s107_s30 = smov 3 }
   0xb   :  { %v89_v21 = vsel %vm6_vm0, %v209_v19, %v208_v18  ;;  %v211_v22 = vld [vmem:[%s381_s0 + $0x8] ss:$16 sm:%s98_s27]   ;;  %s110_s2 = smov 12  ;;  %s246_s3 = smov 40   ;;  %v212_v23 = vld [vmem:[%s381_s0 + $0x7] ss:$16 sm:%s107_s30]  }
   0xc   :  { %66 = vrot.lane.b32.xlu0 %v65_v15, %s245_s24  ;;  %s119_s6 = smov 3  ;;  %v101_v24 = vsel %vm6_vm0, %v211_v22, %v210_v20  ;;  %v213_v25 = vld [vmem:[%s381_s0 + $0x7] ss:$16 sm:%s110_s2]   ;;  %s122_s11 = smov 12  ;;  %vm164_vm14 = vcmask 130144   ;;  %vm176_vm15 = vcmask 97344  }
   0xd   :  { %78 = vrot.lane.b32.xlu1 %v77_v17, %s246_s3  ;;  %v214_v26 = vld [vmem:[%s381_s0 + $0x6] ss:$16 sm:%s119_s6]   ;;  %s247_s12 = smov 36   ;;  %s131_s15 = smov 3  ;;  %v113_v28 = vsel %vm6_vm0, %v213_v25, %v212_v23 }
   0xe   :  { %v215_v27 = vld [vmem:[%s381_s0 + $0x6] ss:$16 sm:%s122_s11]   ;;  %s134_s16 = smov 12  ;;  %v216_v29 = vld [vmem:[%s381_s0 + $0x5] ss:$16 sm:%s131_s15]   ;;  %s143_s19 = smov 3 }
   0xf   :  { %s248_s20 = smov 32   ;;  %v217_v30 = vld [vmem:[%s381_s0 + $0x5] ss:$16 sm:%s134_s16]   ;;  %s146_s23 = smov 12  ;;  %v125_v31 = vsel %vm6_vm0, %v215_v27, %v214_v26  ;;  %v218_v32 = vld [vmem:[%s381_s0 + $0x4] ss:$16 sm:%s143_s19]  }
  0x10   :  { %90 = vrot.lane.b32.xlu0 %v89_v21, %s247_s12  ;;  %s155_s26 = smov 3  ;;  %s158_s27 = smov 12  ;;  %v219_v33 = vld [vmem:[%s381_s0 + $0x4] ss:$16 sm:%s146_s23]   ;;  %v137_v34 = vsel %vm6_vm0, %v217_v30, %v216_v29 }
  0x11   :  { %102 = vrot.lane.b32.xlu1 %v101_v24, %s248_s20  ;;  %s249_s28 = smov 28   ;;  %s167_s2 = smov 3  ;;  %v220_v35 = vld [vmem:[%s381_s0 + $0x3] ss:$16 sm:%s155_s26]   ;;  %v149_v37 = vsel %vm6_vm0, %v219_v33, %v218_v32 }
  0x12   :  { %s170_s5 = smov 12  ;;  %s250_s6 = smov 24   ;;  %v221_v36 = vld [vmem:[%s381_s0 + $0x3] ss:$16 sm:%s158_s27]   ;;  %v222_v38 = vld [vmem:[%s381_s0 + $0x2] ss:$16 sm:%s167_s2]  }
  0x13   :  { %s179_s9 = smov 3  ;;  %v223_v39 = vld [vmem:[%s381_s0 + $0x2] ss:$16 sm:%s170_s5]   ;;  %s182_s14 = smov 12  ;;  %v161_v41 = vsel %vm6_vm0, %v221_v36, %v220_v35 }
  0x14   :  { %114 = vrot.lane.b32.xlu0 %v113_v28, %s249_s28  ;;  %s2_s15 = smov 3  ;;  %s251_s16 = smov 20   ;;  %v224_v42 = vld [vmem:[%s381_s0 + $0x1] ss:$16 sm:%s179_s9]   ;;  %v173_v46 = vsel %vm6_vm0, %v223_v39, %v222_v38 }
  0x15   :  { %126 = vrot.lane.b32.xlu1 %v125_v31, %s250_s6  ;;  %v3_v40 = vld [vmem:[%s381_s0] ss:$16 sm:%s2_s15]   ;;  %s4_s19 = smov 12  ;;  %s252_s24 = smov 16  }
  0x16   :  { %v5_v43 = vld [vmem:[%s381_s0] ss:$16 sm:%s4_s19]   ;;  %v225_v44 = vld [vmem:[%s381_s0 + $0x1] ss:$16 sm:%s182_s14]   ;;  %s253_s0 = smov 12   ;;  %s254_s27 = smov 8  }
  0x17   :  { %v7_v45 = vsel %vm6_vm0, %v5_v43, %v3_v40  ;;  %v185_v47 = vsel %vm6_vm0, %v225_v44, %v224_v42  ;;  %s255_s28 = smov 4   ;;  %vm188_vm0 = vcmask 64544  }
  0x18   :  { %138 = vrot.lane.b32.xlu0 %v137_v34, %s251_s16  ;;  %9 = vst.msk [vmem:[#allocation0] sm:$0xf] %vm8_vm1, %v7_v45  }
  0x19   :  { %150 = vrot.lane.b32.xlu1 %v149_v37, %s252_s24 }
  0x1c   :  { %162 = vrot.lane.b32.xlu0 %v161_v41, %s253_s0 }
  0x1d   :  { %174 = vrot.lane.b32.xlu1 %v173_v46, %s254_s27 }
  0x20   :  { %186 = vrot.lane.b32.xlu0 %v185_v47, %s255_s28 }
  0x76   :  { %v19_v48 = vpop.permute.xlu0 %18  }
  0x77   :  { %21 = vst.msk [vmem:[#allocation0] sm:$0xf] %vm20_vm2, %v19_v48   ;;  %v43_v49 = vpop.permute.xlu1 %42  }
  0x7a   :  { %v31_v50 = vpop.permute.xlu0 %30  }
  0x7b   :  { %33 = vst.msk [vmem:[#allocation0] sm:$0xf] %vm32_vm3, %v31_v50   ;;  %v55_v51 = vpop.permute.xlu1 %54  }
  0x7c   :  { %45 = vst.msk [vmem:[#allocation0] sm:$0xf] %vm44_vm4, %v43_v49  }
  0x7d   :  { %57 = vst.msk [vmem:[#allocation0] sm:$0xf] %vm56_vm5, %v55_v51  }
  0x7e   :  { %v67_v52 = vpop.permute.xlu0 %66  }
  0x7f   :  { %69 = vst.msk [vmem:[#allocation0] sm:$0xf] %vm68_vm6, %v67_v52   ;;  %v79_v53 = vpop.permute.xlu1 %78  }
  0x80   :  { %81 = vst.msk [vmem:[#allocation0] sm:$0xf] %vm80_vm7, %v79_v53  }
  0x82   :  { %v91_v54 = vpop.permute.xlu0 %90  }
  0x83   :  { %93 = vst.msk [vmem:[#allocation0] sm:$0xf] %vm92_vm8, %v91_v54   ;;  %v103_v55 = vpop.permute.xlu1 %102  }
  0x84   :  { %105 = vst.msk [vmem:[#allocation0] sm:$0xf] %vm104_vm9, %v103_v55  }
  0x86   :  { %v115_v56 = vpop.permute.xlu0 %114  }
  0x87   :  { %117 = vst.msk [vmem:[#allocation0] sm:$0xf] %vm116_vm10, %v115_v56   ;;  %v127_v57 = vpop.permute.xlu1 %126  }
  0x88   :  { %129 = vst.msk [vmem:[#allocation0] sm:$0xf] %vm128_vm11, %v127_v57  }
  0x8a   :  { %v139_v58 = vpop.permute.xlu0 %138  }
  0x8b   :  { %141 = vst.msk [vmem:[#allocation0] sm:$0xf] %vm140_vm12, %v139_v58   ;;  %v151_v59 = vpop.permute.xlu1 %150  }
  0x8c   :  { %153 = vst.msk [vmem:[#allocation0] sm:$0xf] %vm152_vm13, %v151_v59  }
  0x8e   :  { %v163_v60 = vpop.permute.xlu0 %162  }
  0x8f   :  { %165 = vst.msk [vmem:[#allocation0] sm:$0xf] %vm164_vm14, %v163_v60   ;;  %v175_v61 = vpop.permute.xlu1 %174  }
  0x90   :  { %177 = vst.msk [vmem:[#allocation0] sm:$0xf] %vm176_vm15, %v175_v61  }
  0x92   :  { %v187_v62 = vpop.permute.xlu0 %186  }
  0x93   :  { %189 = vst.msk [vmem:[#allocation0] sm:$0xf] %vm188_vm0, %v187_v62  }
  0x9a   :  { %v193_v63 = vld [vmem:[#allocation0] sm:$0xf] }
  0x9b   :  { %195 = vst [vmem:[%s382_s1] sm:$0xf] %v193_v63 }

// kernel: fwd.1
= control target key start
LH: loop header
LB: loop body
LE: loop exit
PB: predicated region body
PF: predicated region fallthrough
CT: control target
= control target key end

     0   :  { %13 = vsyncpa [#allocation3], 0  ;;  %s3272_s27 = smov [#allocation2]   ;;  %s4515_s0 = inlined_call_operand.vmem [shape: f32[4,128], index: 0, kind: input, shape index: {}]   ;;  %s4516_s1 = inlined_call_operand.vmem [shape: f32[64,192], index: 1, kind: input, shape index: {}]   ;;  %s4517_s2 = inlined_call_operand.vmem [shape: f32[1,192], index: 2, kind: input, shape index: {}]   ;;  %s4518_s3 = inlined_call_operand.hbm [shape: f32[128,8], index: 3, kind: input, shape index: {}]   ;;  %s4519_s4 = inlined_call_operand.vmem [shape: f32[192,8], index: 4, kind: input, shape index: {}]   ;;  %s4520_s5 = inlined_call_operand.vmem [shape: f32[1,8], index: 5, kind: input, shape index: {}]   ;;  %s4521_s6 = inlined_call_operand.vmem [shape: f32[1,8], index: 6, kind: input, shape index: {}]   ;;  %s4522_s7 = inlined_call_operand.vmem [shape: f32[1,8], index: 7, kind: input, shape index: {}]   ;;  %s4523_s8 = inlined_call_operand.vmem [shape: f32[4,8], index: 8, kind: output, shape index: {}]  }
   0x1   :  { %s25_s28 = sshll.u32 %s3272_s27, 4  ;;  %s3248_s9 = scalar_lea.hbm %s4518_s3, 2048  ;;  %s26_s28 = int_to_ptr.vmem [resolvable:$true] %s25_s28 }
   0x2   :  { %p3249_p0 = scmp.ne.s32.totalorder %s4518_s3, %s3248_s9  ;;  %p3252_p1 = scmp.lt.u32.totalorder %s3248_s9, %s4518_s3 }
   0x4   :  { %p3254_p2 = pnand %p3252_p1, %p3249_p0 }
   0x6   :  { %3257 = shalt.err (!%p3254_p2)
}
   0x7   :  { %s3258_s14 = scalar_lea.vmem %s26_s28, 2048  ;;  %p3263_p4 = scmp.lt.s32.totalorder %s26_s28, %s26_s28 }
   0x8   :  { %p3259_p3 = scmp.ne.s32.totalorder %s26_s28, %s3258_s14  ;;  %p3264_p5 = scmp.lt.s32.totalorder %s3258_s14, %s3258_s14 }
   0xa   :  { %p3265_p6 = por %p3264_p5, %p3263_p4 }
   0xc   :  { %p3266_p7 = pnand %p3265_p6, %p3259_p3 }
   0xe   :  { %3269 = shalt.err (!%p3266_p7)
}
   0xf   :  { %s3273_s15 = smov 128   ;;  %s3274_s16 = smov 8  }
  0x10   :  { %31 = dma.hbm_to_vmem [thread:$0]  %s4518_s3, 2048, %s26_s28, [#allocation3], %s3273_s15, %s3273_s15, %s3274_s16  }
  0x11   :  { %3270 = dma.done.wait [#allocation3], 2048  }
  0x12   :  { %3271 = vsyncadd [#allocation3], 4294965248  ;;  %v4524_v0 = vmov 0.0   ;;  %v45_v1 = vld [vmem:[%s4516_s1 + $0x8] sm:$0xff]  ;;  %v47_v2 = vld [vmem:[%s4516_s1 + $0x18] sm:$0xff]  ;;  %vm72_vm0 = vcmask 523264  }
  0x13   :  { %156 = vmatprep.mubr.f32.mxu0 %v4524_v0  ;;  %v44_v3 = vld [vmem:[%s4516_s1] sm:$0xff]  ;;  %v76_v4 = vand.u32 4294901760, %v45_v1  ;;  %v80_v5 = vand.u32 4294901760, %v47_v2  ;;  %v46_v6 = vld [vmem:[%s4516_s1 + $0x10] sm:$0xff]  ;;  %v49_v8 = vld [vmem:[%s4516_s1 + $0x28] sm:$0xff] }
  0x14   :  { %v78_v7 = vand.u32 4294901760, %v44_v3  ;;  %v51_v9 = vld [vmem:[%s4516_s1 + $0x38] sm:$0xff]  ;;  %v82_v10 = vand.u32 4294901760, %v46_v6  ;;  %v84_v11 = vand.u32 4294901760, %v49_v8  ;;  %v48_v13 = vld [vmem:[%s4516_s1 + $0x20] sm:$0xff]  ;;  %v50_v14 = vld [vmem:[%s4516_s1 + $0x30] sm:$0xff] }
  0x15   :  { %v88_v12 = vand.u32 4294901760, %v51_v9  ;;  %v53_v15 = vld [vmem:[%s4516_s1 + $0x48] sm:$0xff]  ;;  %v3369_v16 = vpack.c.bf16 %v80_v5, %v76_v4  ;;  %v3371_v17 = vsub.f32 %v45_v1, %v76_v4  ;;  %v3373_v18 = vsub.f32 %v47_v2, %v80_v5  ;;  %v55_v19 = vld [vmem:[%s4516_s1 + $0x58] sm:$0xff]  ;;  %v52_v20 = vld [vmem:[%s4516_s1 + $0x40] sm:$0xff] }
  0x16   :  { %v54_v21 = vld [vmem:[%s4516_s1 + $0x50] sm:$0xff]  ;;  %v3384_v22 = vpack.c.bf16 %v82_v10, %v78_v7  ;;  %v3386_v23 = vsub.f32 %v44_v3, %v78_v7  ;;  %v3388_v24 = vsub.f32 %v46_v6, %v82_v10  ;;  %v57_v26 = vld [vmem:[%s4516_s1 + $0x68] sm:$0xff]  ;;  %v3396_v27 = vsub.f32 %v49_v8, %v84_v11  ;;  %v59_v35 = vld [vmem:[%s4516_s1 + $0x78] sm:$0xff] }
  0x17   :  { %v3390_v25 = vpack.c.bf16 %v88_v12, %v84_v11  ;;  %2750 = vmatprep.subr.bf16.mxu0 %v3369_v16  ;;  %v86_v28 = vand.u32 4294901760, %v48_v13  ;;  %v90_v29 = vand.u32 4294901760, %v50_v14  ;;  %v92_v30 = vand.u32 4294901760, %v53_v15  ;;  %v56_v36 = vld [vmem:[%s4516_s1 + $0x60] sm:$0xff]  ;;  %v58_v41 = vld [vmem:[%s4516_s1 + $0x70] sm:$0xff] }
  0x18   :  { %2752 = vmatpush1.bf16.msra.mxu0 %v3384_v22  ;;  %v3399_v31 = vsub.f32 %v51_v9, %v88_v12  ;;  %v96_v32 = vand.u32 4294901760, %v55_v19  ;;  %v94_v33 = vand.u32 4294901760, %v52_v20  ;;  %v98_v34 = vand.u32 4294901760, %v54_v21  ;;  %v43_v42 = vld [vmem:[%s4515_s0] sm:$0xf] }
  0x19   :  { %2754 = vmatprep.subr.bf16.mxu0 %v3390_v25  ;;  %v3408_v37 = vpack.c.bf16 %v90_v29, %v86_v28  ;;  %v3410_v38 = vsub.f32 %v48_v13, %v86_v28  ;;  %v3412_v39 = vsub.f32 %v50_v14, %v90_v29  ;;  %v100_v40 = vand.u32 4294901760, %v57_v26 }
  0x1a   :  { %v3420_v43 = vpack.c.bf16 %v96_v32, %v92_v30  ;;  %v3422_v44 = vsub.f32 %v53_v15, %v92_v30  ;;  %v3424_v45 = vsub.f32 %v55_v19, %v96_v32  ;;  %v3426_v46 = vpack.c.bf16 %v98_v34, %v94_v33 }
  0x1b   :  { %v3428_v47 = vsub.f32 %v52_v20, %v94_v33  ;;  %v3430_v48 = vsub.f32 %v54_v21, %v98_v34  ;;  %v104_v49 = vand.u32 4294901760, %v59_v35  ;;  %v102_v50 = vand.u32 4294901760, %v56_v36 }
  0x1c   :  { %2756 = vmatpush1.bf16.msra.mxu0 %v3408_v37  ;;  %v106_v51 = vand.u32 4294901760, %v58_v41  ;;  %v170_v52 = vand.u32 4294901760, %v3371_v17  ;;  %v182_v53 = vand.u32 4294901760, %v3373_v18  ;;  %v74_v54 = vsel %vm72_vm0, %v43_v42, 0 }
  0x1d   :  { %2758 = vmatprep.subr.bf16.mxu0 %v3420_v43  ;;  %v3437_v55 = vpack.c.bf16 %v104_v49, %v100_v40  ;;  %v3439_v56 = vsub.f32 %v57_v26, %v100_v40  ;;  %v3441_v57 = vsub.f32 %v59_v35, %v104_v49  ;;  %v3443_v58 = vand.u32 4294901760, %v74_v54 }
  0x1e   :  { %v3445_v59 = vpack.c.bf16 %v106_v51, %v102_v50  ;;  %v3447_v60 = vsub.f32 %v56_v36, %v102_v50  ;;  %v171_v61 = vsub.f32 %v3371_v17, %v170_v52  ;;  %v183_v62 = vsub.f32 %v3373_v18, %v182_v53 }
  0x1f   :  { %v3455_v63 = vsub.f32 %v58_v41, %v106_v51  ;;  %v3458_v1 = vsub.f32 %v74_v54, %v3443_v58  ;;  %v176_v2 = vand.u32 4294901760, %v3386_v23  ;;  %v188_v3 = vand.u32 4294901760, %v3388_v24 }
  0x20   :  { %2760 = vmatpush1.bf16.msra.mxu0 %v3426_v46  ;;  %v172_v4 = vand.u32 4294901760, %v171_v61  ;;  %v184_v5 = vand.u32 4294901760, %v183_v62  ;;  %v194_v6 = vand.u32 4294901760, %v3396_v27  ;;  %v206_v7 = vand.u32 4294901760, %v3399_v31 }
  0x21   :  { %2762 = vmatprep.subr.bf16.mxu0 %v3437_v55  ;;  %v159_v8 = vand.u32 4294901760, %v3458_v1  ;;  %v177_v9 = vsub.f32 %v3386_v23, %v176_v2  ;;  %v189_v10 = vsub.f32 %v3388_v24, %v188_v3  ;;  %v200_v11 = vand.u32 4294901760, %v3410_v38 }
  0x22   :  { %v2765_v12 = vpack.c.bf16 %v184_v5, %v172_v4  ;;  %v195_v13 = vsub.f32 %v3396_v27, %v194_v6  ;;  %v207_v14 = vsub.f32 %v3399_v31, %v206_v7  ;;  %v212_v15 = vand.u32 4294901760, %v3412_v39 }
  0x23   :  { %v160_v19 = vsub.f32 %v3458_v1, %v159_v8  ;;  %v178_v20 = vand.u32 4294901760, %v177_v9  ;;  %v190_v21 = vand.u32 4294901760, %v189_v10  ;;  %v201_v26 = vsub.f32 %v3410_v38, %v200_v11 }
  0x24   :  { %2764 = vmatpush1.bf16.msra.mxu0 %v3445_v59  ;;  %v196_v28 = vand.u32 4294901760, %v195_v13  ;;  %v208_v29 = vand.u32 4294901760, %v207_v14  ;;  %v213_v30 = vsub.f32 %v3412_v39, %v212_v15  ;;  %v218_v32 = vand.u32 4294901760, %v3422_v44 }
  0x25   :  { %2766 = vmatprep.subr.bf16.mxu0 %v2765_v12  ;;  %v161_v33 = vand.u32 4294901760, %v160_v19  ;;  %v2767_v34 = vpack.c.bf16 %v190_v21, %v178_v20  ;;  %v202_v35 = vand.u32 4294901760, %v201_v26  ;;  %v230_v36 = vand.u32 4294901760, %v3424_v45 }
  0x26   :  { %v2769_v40 = vpack.c.bf16 %v208_v29, %v196_v28  ;;  %v214_v41 = vand.u32 4294901760, %v213_v30  ;;  %v219_v42 = vsub.f32 %v3422_v44, %v218_v32  ;;  %v224_v49 = vand.u32 4294901760, %v3428_v47 }
  0x27   :  { %162 = vmatmul.mubr.f32.vlgmr.msra.gmra.mrb[0].mxu0 %v161_v33  ;;  %v231_v50 = vsub.f32 %v3424_v45, %v230_v36  ;;  %v236_v51 = vand.u32 4294901760, %v3430_v48  ;;  %v242_v54 = vand.u32 4294901760, %v3439_v56  ;;  %v254_v61 = vand.u32 4294901760, %v3441_v57 }
  0x28   :  { %2768 = vmatpush1.bf16.msra.mxu0 %v2767_v34  ;;  %v2771_v62 = vpack.c.bf16 %v214_v41, %v202_v35  ;;  %v220_v4 = vand.u32 4294901760, %v219_v42  ;;  %v225_v5 = vsub.f32 %v3428_v47, %v224_v49  ;;  %v248_v9 = vand.u32 4294901760, %v3447_v60  ;;  %312 = vmatprep.mubr.f32.mxu0 %v4524_v0 }
  0x29   :  { %2770 = vmatprep.subr.bf16.mxu0 %v2769_v40  ;;  %v232_v10 = vand.u32 4294901760, %v231_v50  ;;  %v237_v12 = vsub.f32 %v3430_v48, %v236_v51  ;;  %v243_v13 = vsub.f32 %v3439_v56, %v242_v54  ;;  %v255_v14 = vsub.f32 %v3441_v57, %v254_v61 }
  0x2a   :  { %v226_v19 = vand.u32 4294901760, %v225_v5  ;;  %v249_v20 = vsub.f32 %v3447_v60, %v248_v9  ;;  %v260_v21 = vand.u32 4294901760, %v3455_v63  ;;  %v2781_v50 = vpack.c.bf16 %v3373_v18, %v3371_v17 }
  0x2b   :  { %v2773_v26 = vpack.c.bf16 %v232_v10, %v220_v4  ;;  %v238_v28 = vand.u32 4294901760, %v237_v12  ;;  %v244_v29 = vand.u32 4294901760, %v243_v13  ;;  %v256_v30 = vand.u32 4294901760, %v255_v14 }
  0x2c   :  { %2772 = vmatpush1.bf16.msra.mxu0 %v2771_v62  ;;  %v250_v33 = vand.u32 4294901760, %v249_v20  ;;  %v261_v34 = vsub.f32 %v3455_v63, %v260_v21  ;;  %v2783_v4 = vpack.c.bf16 %v3388_v24, %v3386_v23  ;;  %v2785_v62 = vpack.c.bf16 %v3399_v31, %v3396_v27 }
  0x2d   :  { %2774 = vmatprep.subr.bf16.mxu0 %v2773_v26  ;;  %v2775_v35 = vpack.c.bf16 %v238_v28, %v226_v19  ;;  %v2777_v40 = vpack.c.bf16 %v256_v30, %v244_v29  ;;  %v2787_v5 = vpack.c.bf16 %v3412_v39, %v3410_v38  ;;  %v2789_v10 = vpack.c.bf16 %v3424_v45, %v3422_v44  ;;  %v949_v39 = vld [vmem:[%s4519_s4 + $0x10] sm:$0xff]  ;;  %v958_v29 = vld [vmem:[%s4519_s4 + $0x58] sm:$0xff] }
  0x2e   :  { %v262_v41 = vand.u32 4294901760, %v261_v34  ;;  %v2791_v12 = vpack.c.bf16 %v3430_v48, %v3428_v47  ;;  %v2793_v13 = vpack.c.bf16 %v3441_v57, %v3439_v56  ;;  %v2795_v14 = vpack.c.bf16 %v3455_v63, %v3447_v60  ;;  %v957_v28 = vld [vmem:[%s4519_s4 + $0x50] sm:$0xff] }
  0x2f   :  { %v2813_v63 = vpack.c.bf16 %v182_v53, %v170_v52  ;;  %v2815_v19 = vpack.c.bf16 %v188_v3, %v176_v2  ;;  %v2817_v20 = vpack.c.bf16 %v206_v7, %v194_v6  ;;  %v2819_v17 = vpack.c.bf16 %v212_v15, %v200_v11  ;;  %v951_v53 = vld [vmem:[%s4519_s4 + $0x20] sm:$0xff]  ;;  %v953_v2 = vld [vmem:[%s4519_s4 + $0x30] sm:$0xff]  ;;  %v954_v3 = vld [vmem:[%s4519_s4 + $0x38] sm:$0xff] }
  0x30   :  { %2776 = vmatpush1.bf16.msra.mxu0 %v2775_v35  ;;  %v2779_v42 = vpack.c.bf16 %v262_v41, %v250_v33  ;;  %v2821_v18 = vpack.c.bf16 %v230_v36, %v218_v32  ;;  %v2823_v23 = vpack.c.bf16 %v236_v51, %v224_v49  ;;  %v2825_v24 = vpack.c.bf16 %v254_v61, %v242_v54  ;;  %v955_v36 = vld [vmem:[%s4519_s4 + $0x40] sm:$0xff]  ;;  %v956_v49 = vld [vmem:[%s4519_s4 + $0x48] sm:$0xff] }
  0x31   :  { %2778 = vmatprep.subr.bf16.mxu0 %v2777_v40  ;;  %v2827_v27 = vpack.c.bf16 %v260_v21, %v248_v9  ;;  %v981_v45 = vand.u32 4294901760, %v949_v39  ;;  %v4526_v47 = vmov 0.0|0.0   ;;  %v987_v57 = vand.u32 4294901760, %v951_v53 }
  0x32   :  { %2845 = vmatprep.subr.bf16.mxu1 %v4526_v47  ;;  %v993_v7 = vand.u32 4294901760, %v953_v2  ;;  %v999_v54 = vand.u32 4294901760, %v955_v36  ;;  %v1002_v61 = vand.u32 4294901760, %v956_v49  ;;  %v1005_v33 = vand.u32 4294901760, %v957_v28 }
  0x33   :  { %v3614_v48 = vsub.f32 %v949_v39, %v981_v45  ;;  %v3629_v60 = vsub.f32 %v951_v53, %v987_v57  ;;  %v1008_v34 = vand.u32 4294901760, %v958_v29  ;;  %v967_v53 = vld [vmem:[%s4519_s4 + $0xa0] sm:$0xff] }
  0x34   :  { %2780 = vmatpush1.bf16.msra.mxu0 %v2779_v42  ;;  %v3646_v15 = vsub.f32 %v953_v2, %v993_v7  ;;  %v3663_v21 = vsub.f32 %v955_v36, %v999_v54  ;;  %v3665_v26 = vsub.f32 %v956_v49, %v1002_v61  ;;  %v3680_v40 = vsub.f32 %v957_v28, %v1005_v33  ;;  %v959_v42 = vld [vmem:[%s4519_s4 + $0x60] sm:$0xff]  ;;  %v970_v36 = vld [vmem:[%s4519_s4 + $0xb8] sm:$0xff] }
  0x35   :  { %2782 = vmatprep.subr.bf16.mxu0 %v2781_v50  ;;  %v3682_v41 = vsub.f32 %v958_v29, %v1008_v34  ;;  %v960_v50 = vld [vmem:[%s4519_s4 + $0x68] sm:$0xff]  ;;  %v1044_v29 = vand.u32 4294901760, %v970_v36 }
  0x36   :  { %v2930_v30 = vpack.c.bf16 %v3665_v26, %v3663_v21 }
  0x37   :  { %314 = vmatmul.mubr.f32.vlgmr.msra.gmra.mrb[0].mxu0 %v3443_v58 }
  0x38   :  { %2784 = vmatpush1.bf16.msra.mxu0 %v2783_v4  ;;  %416 = vmatprep.mubr.f32.mxu0 %v4524_v0  ;;  %v2933_v4 = vpack.c.bf16 %v3682_v41, %v3680_v40 }
  0x39   :  { %2786 = vmatprep.subr.bf16.mxu0 %v2785_v62  ;;  %v1011_v62 = vand.u32 4294901760, %v959_v42 }
  0x3c   :  { %2788 = vmatpush1.bf16.msra.mxu0 %v2787_v5  ;;  %v1014_v5 = vand.u32 4294901760, %v960_v50 }
  0x3d   :  { %2790 = vmatprep.subr.bf16.mxu0 %v2789_v10  ;;  %v3695_v10 = vpack.c.bf16 %v1002_v61, %v999_v54 }
  0x3f   :  { %4583 = vst [vmem:[#allocation9_spill] sm:$0xff] %v3695_v10 }
  0x40   :  { %2792 = vmatpush1.bf16.msra.mxu0 %v2791_v12  ;;  %v3697_v12 = vsub.f32 %v959_v42, %v1011_v62  ;;  %v3779_v42 = vsub.f32 %v970_v36, %v1044_v29 }
  0x41   :  { %2794 = vmatprep.subr.bf16.mxu0 %v2793_v13  ;;  %v3699_v13 = vsub.f32 %v960_v50, %v1014_v5 }
  0x44   :  { %2796 = vmatpush1.bf16.msra.mxu0 %v2795_v14  ;;  %v961_v14 = vld [vmem:[%s4519_s4 + $0x70] sm:$0xff] }
  0x45   :  { %2798 = vmatprep.subr.bf16.mxu0 %v3369_v16 }
  0x47   :  { %419 = vmatmul.mubr.f32.vlgmr.msra.gmra.mrb[0].mxu0 %v3458_v1 }
  0x48   :  { %2800 = vmatpush1.bf16.msra.mxu0 %v3384_v22  ;;  %505 = vmatprep.mubr.f32.mxu0 %v4524_v0 }
  0x49   :  { %2802 = vmatprep.subr.bf16.mxu0 %v3390_v25 }
  0x4c   :  { %2804 = vmatpush1.bf16.msra.mxu0 %v3408_v37 }
  0x4d   :  { %2806 = vmatprep.subr.bf16.mxu0 %v3420_v43 }
  0x50   :  { %2808 = vmatpush1.bf16.msra.mxu0 %v3426_v46 }
  0x51   :  { %2810 = vmatprep.subr.bf16.mxu0 %v3437_v55 }
  0x54   :  { %2812 = vmatpush1.bf16.msra.mxu0 %v3445_v59 }
  0x55   :  { %2814 = vmatprep.subr.bf16.mxu0 %v2813_v63  ;;  %v962_v63 = vld [vmem:[%s4519_s4 + $0x78] sm:$0xff] }
  0x57   :  { %509 = vmatmul.mubr.f32.vlgmr.msra.gmra.mrb[0].mxu0 %v159_v8  ;;  %v996_v8 = vand.u32 4294901760, %v954_v3 }
  0x58   :  { %2816 = vmatpush1.bf16.msra.mxu0 %v2815_v19  ;;  %627 = vmatprep.mubr.f32.mxu0 %v4524_v0  ;;  %v2936_v19 = vpack.c.bf16 %v3699_v13, %v3697_v12 }
  0x59   :  { %2818 = vmatprep.subr.bf16.mxu0 %v2817_v20  ;;  %v3648_v32 = vsub.f32 %v954_v3, %v996_v8  ;;  %v3678_v35 = vpack.c.bf16 %v996_v8, %v993_v7  ;;  %v3711_v20 = vpack.c.bf16 %v1008_v34, %v1005_v33  ;;  %v969_v8 = vld [vmem:[%s4519_s4 + $0xb0] sm:$0xff] }
  0x5b   :  { %v2927_v51 = vpack.c.bf16 %v3648_v32, %v3646_v15  ;;  %4582 = vst [vmem:[#allocation8_spill] sm:$0xff] %v3678_v35  ;;  %4584 = vst [vmem:[#allocation10_spill] sm:$0xff] %v3711_v20 }
  0x5c   :  { %2820 = vmatpush1.bf16.msra.mxu0 %v2819_v17  ;;  %v1017_v17 = vand.u32 4294901760, %v961_v14 }
  0x5d   :  { %2822 = vmatprep.subr.bf16.mxu0 %v2821_v18  ;;  %v1020_v18 = vand.u32 4294901760, %v962_v63 }
  0x5e   :  { %v3726_v39 = vsub.f32 %v961_v14, %v1017_v17 }
  0x5f   :  { %v3761_v49 = vpack.c.bf16 %v1020_v18, %v1017_v17  ;;  %v1095_v17 = vand.u32 4294901760, %v3614_v48 }
  0x60   :  { %2824 = vmatpush1.bf16.msra.mxu0 %v2823_v23  ;;  %v963_v23 = vld [vmem:[%s4519_s4 + $0x80] sm:$0xff] }
  0x61   :  { %2826 = vmatprep.subr.bf16.mxu0 %v2825_v24  ;;  %v964_v24 = vld [vmem:[%s4519_s4 + $0x88] sm:$0xff]  ;;  %4586 = vst [vmem:[#allocation12_spill] sm:$0xff] %v3761_v49 }
  0x64   :  { %2828 = vmatpush1.bf16.msra.mxu0 %v2827_v27  ;;  %v965_v27 = vld [vmem:[%s4519_s4 + $0x90] sm:$0xff] }
  0x65   :  { %2830 = vmatprep.subr.bf16.mxu0 %v3369_v16  ;;  %v947_v16 = vld [vmem:[%s4519_s4] sm:$0xff] }
  0x67   :  { %629 = vmatmul.mubr.f32.vlgmr.msra.gmra.mrb[0].mxu0 %v3443_v58 }
  0x68   :  { %2832 = vmatpush1.bf16.msra.mxu0 %v3384_v22  ;;  %715 = vmatprep.mubr.f32.mxu0 %v4524_v0  ;;  %v948_v22 = vld [vmem:[%s4519_s4 + $0x8] sm:$0xff] }
  0x69   :  { %2834 = vmatprep.subr.bf16.mxu0 %v3390_v25  ;;  %v975_v25 = vand.u32 4294901760, %v947_v16  ;;  %v978_v31 = vand.u32 4294901760, %v948_v22 }
  0x6b   :  { %v3602_v38 = vsub.f32 %v948_v22, %v978_v31  ;;  %v1026_v22 = vand.u32 4294901760, %v964_v24 }
  0x6c   :  { %2836 = vmatpush1.bf16.msra.mxu0 %v3408_v37  ;;  %v3600_v37 = vsub.f32 %v947_v16, %v975_v25  ;;  %v1023_v16 = vand.u32 4294901760, %v963_v23 }
  0x6d   :  { %2838 = vmatprep.subr.bf16.mxu0 %v3420_v43  ;;  %v950_v43 = vld [vmem:[%s4519_s4 + $0x18] sm:$0xff]  ;;  %v1088_v14 = vand.u32 4294901760, %v3602_v38 }
  0x6e   :  { %v2918_v44 = vpack.c.bf16 %v3602_v38, %v3600_v37 }
  0x70   :  { %2840 = vmatpush1.bf16.msra.mxu0 %v3426_v46  ;;  %v984_v46 = vand.u32 4294901760, %v950_v43 }
  0x71   :  { %2842 = vmatprep.subr.bf16.mxu0 %v3437_v55  ;;  %v952_v55 = vld [vmem:[%s4519_s4 + $0x28] sm:$0xff] }
  0x72   :  { %v3616_v52 = vsub.f32 %v950_v43, %v984_v46  ;;  %v3644_v11 = vpack.c.bf16 %v984_v46, %v981_v45  ;;  %v3728_v43 = vsub.f32 %v962_v63, %v1020_v18  ;;  %v3731_v45 = vsub.f32 %v963_v23, %v1023_v16 }
  0x73   :  { %v3733_v46 = vsub.f32 %v964_v24, %v1026_v22 }
  0x74   :  { %2844 = vmatpush1.bf16.msra.mxu0 %v3445_v59  ;;  %v2921_v56 = vpack.c.bf16 %v3616_v52, %v3614_v48  ;;  %v3627_v59 = vpack.c.bf16 %v978_v31, %v975_v25  ;;  %4580 = vst [vmem:[#allocation6_spill] sm:$0xff] %v3644_v11  ;;  %v966_v25 = vld [vmem:[%s4519_s4 + $0x98] sm:$0xff]  ;;  %v1029_v31 = vand.u32 4294901760, %v965_v27  ;;  %v1102_v18 = vand.u32 4294901760, %v3616_v52 }
  0x75   :  { %2917 = vmatprep.subr.bf16.mxu0 %v4526_v47  ;;  %v2942_v2 = vpack.c.bf16 %v3733_v46, %v3731_v45 }
  0x76   :  { %4579 = vst [vmem:[#allocation5_spill] sm:$0xff] %v3627_v59  ;;  %2847 = vmatpush1.bf16.msra.mxu1 %v3627_v59  ;;  %v3804_v23 = vpack.c.bf16 %v1102_v18, %v1095_v17 }
  0x77   :  { %717 = vmatmul.mubr.f32.vlgmr.msra.gmra.mrb[0].mxu0 %v3443_v58  ;;  %v990_v58 = vand.u32 4294901760, %v952_v55  ;;  %2848 = vmatprep.subr.bf16.mxu1 %v4526_v47 }
  0x78   :  { %2919 = vmatpush1.bf16.msra.mxu0 %v2918_v44  ;;  %v1032_v44 = vand.u32 4294901760, %v966_v25 }
  0x79   :  { %2920 = vmatprep.subr.bf16.mxu0 %v4526_v47  ;;  %v3631_v1 = vsub.f32 %v952_v55, %v990_v58  ;;  %v3661_v9 = vpack.c.bf16 %v990_v58, %v987_v57  ;;  %v968_v55 = vld [vmem:[%s4519_s4 + $0xa8] sm:$0xff]  ;;  %v3744_v57 = vpack.c.bf16 %v1014_v5, %v1011_v62  ;;  %v3747_v58 = vsub.f32 %v965_v27, %v1029_v31 }
  0x7a   :  { %2850 = vmatpush1.bf16.msra.mxu1 %v3644_v11  ;;  %v3751_v3 = vsub.f32 %v966_v25, %v1032_v44  ;;  %v1038_v7 = vand.u32 4294901760, %v968_v55  ;;  %v3783_v50 = vpack.c.bf16 %v1032_v44, %v1029_v31  ;;  %v1081_v5 = vand.u32 4294901760, %v3600_v37 }
  0x7b   :  { %v2924_v6 = vpack.c.bf16 %v3631_v1, %v3629_v60  ;;  %2851 = vmatprep.subr.bf16.mxu1 %v4526_v47  ;;  %4581 = vst [vmem:[#allocation7_spill] sm:$0xff] %v3661_v9  ;;  %4585 = vst [vmem:[#allocation11_spill] sm:$0xff] %v3744_v57  ;;  %v1089_v27 = vsub.f32 %v3602_v38, %v1088_v14  ;;  %v1109_v25 = vand.u32 4294901760, %v3629_v60  ;;  %v1116_v31 = vand.u32 4294901760, %v3631_v1 }
  0x7c   :  { %2922 = vmatpush1.bf16.msra.mxu0 %v2921_v56  ;;  %v2939_v56 = vpack.c.bf16 %v3728_v43, %v3726_v39  ;;  %v2945_v54 = vpack.c.bf16 %v3751_v3, %v3747_v58  ;;  %v3768_v28 = vsub.f32 %v968_v55, %v1038_v7  ;;  %4588 = vst [vmem:[#allocation14_spill] sm:$0xff] %v3783_v50 }
  0x7d   :  { %2923 = vmatprep.subr.bf16.mxu0 %v4526_v47  ;;  %v3797_v63 = vpack.c.bf16 %v1088_v14, %v1081_v5  ;;  %v1082_v24 = vsub.f32 %v3600_v37, %v1081_v5  ;;  %v1103_v55 = vsub.f32 %v3616_v52, %v1102_v18  ;;  %v1117_v36 = vsub.f32 %v3631_v1, %v1116_v31 }
  0x7e   :  { %2853 = vmatpush1.bf16.msra.mxu1 %v3661_v9  ;;  %v1137_v52 = vand.u32 4294901760, %v3663_v21 }
  0x7f   :  { %2854 = vmatprep.subr.bf16.mxu1 %v4526_v47  ;;  %v1104_v38 = vand.u32 4294901760, %v1103_v55 }
  0x80   :  { %2925 = vmatpush1.bf16.msra.mxu0 %v2924_v6  ;;  %v1035_v6 = vand.u32 4294901760, %v967_v53 }
  0x81   :  { %2926 = vmatprep.subr.bf16.mxu0 %v4526_v47 }
  0x82   :  { %2856 = vmatpush1.bf16.msra.mxu1 %v3678_v35  ;;  %v3766_v61 = vsub.f32 %v967_v53, %v1035_v6  ;;  %v3790_v62 = vpack.c.bf16 %v1038_v7, %v1035_v6  ;;  %v1096_v53 = vsub.f32 %v3614_v48, %v1095_v17  ;;  %v1130_v6 = vand.u32 4294901760, %v3648_v32 }
  0x83   :  { %2857 = vmatprep.subr.bf16.mxu1 %v4526_v47 }
  0x84   :  { %2928 = vmatpush1.bf16.msra.mxu0 %v2927_v51  ;;  %v1041_v51 = vand.u32 4294901760, %v969_v8  ;;  %v2948_v33 = vpack.c.bf16 %v3768_v28, %v3766_v61  ;;  %4589 = vst [vmem:[#allocation15_spill] sm:$0xff] %v3790_v62  ;;  %v1097_v37 = vand.u32 4294901760, %v1096_v53  ;;  %v1131_v14 = vsub.f32 %v3648_v32, %v1130_v6 }
  0x85   :  { %2929 = vmatprep.subr.bf16.mxu0 %v4526_v47 }
  0x86   :  { %2859 = vmatpush1.bf16.msra.mxu1 %v3695_v10  ;;  %v3777_v34 = vsub.f32 %v969_v8, %v1041_v51  ;;  %v3820_v7 = vpack.c.bf16 %v1104_v38, %v1097_v37  ;;  %v1110_v8 = vsub.f32 %v3629_v60, %v1109_v25  ;;  %v1132_v1 = vand.u32 4294901760, %v1131_v14 }
  0x87   :  { %2860 = vmatprep.subr.bf16.mxu1 %v4526_v47  ;;  %v1165_v38 = vand.u32 4294901760, %v3697_v12 }
  0x88   :  { %2931 = vmatpush1.bf16.msra.mxu0 %v2930_v30  ;;  %v3772_v30 = vpack.c.bf16 %v1026_v22, %v1023_v16  ;;  %v1083_v16 = vand.u32 4294901760, %v1082_v24  ;;  %v1090_v22 = vand.u32 4294901760, %v1089_v27  ;;  %v1111_v48 = vand.u32 4294901760, %v1110_v8 }
  0x89   :  { %2932 = vmatprep.subr.bf16.mxu0 %v4526_v47  ;;  %v1151_v24 = vand.u32 4294901760, %v3680_v40  ;;  %v1158_v27 = vand.u32 4294901760, %v3682_v41 }
  0x8a   :  { %2862 = vmatpush1.bf16.msra.mxu1 %v3711_v20  ;;  %4587 = vst [vmem:[#allocation13_spill] sm:$0xff] %v3772_v30  ;;  %v3812_v44 = vpack.c.bf16 %v1090_v22, %v1083_v16  ;;  %v1138_v22 = vsub.f32 %v3663_v21, %v1137_v52 }
  0x8b   :  { %2863 = vmatprep.subr.bf16.mxu1 %v4526_v47  ;;  %v3840_v53 = vpack.c.bf16 %v1158_v27, %v1151_v24  ;;  %v1152_v21 = vsub.f32 %v3680_v40, %v1151_v24 }
  0x8c   :  { %2934 = vmatpush1.bf16.msra.mxu0 %v2933_v4  ;;  %v2951_v4 = vpack.c.bf16 %v3779_v42, %v3777_v34  ;;  %v1139_v55 = vand.u32 4294901760, %v1138_v22 }
  0x8d   :  { %2935 = vmatprep.subr.bf16.mxu0 %v4526_v47 }
  0x8e   :  { %2865 = vmatpush1.bf16.msra.mxu1 %v3744_v57 }
  0x8f   :  { %2866 = vmatprep.subr.bf16.mxu1 %v4526_v47 }
  0x90   :  { %2937 = vmatpush1.bf16.msra.mxu0 %v2936_v19  ;;  %v3799_v19 = vpack.c.bf16 %v1044_v29, %v1041_v51  ;;  %v62_v51 = vlaneseq  ;;  %v1118_v29 = vand.u32 4294901760, %v1117_v36 }
  0x91   :  { %2938 = vmatprep.subr.bf16.mxu0 %v4526_v47 }
  0x92   :  { %2868 = vmatpush1.bf16.msra.mxu1 %v3761_v49  ;;  %4590 = vst [vmem:[#allocation16_spill] sm:$0xff] %v3799_v19  ;;  %v63_v17 = vshrl.u32 %v62_v51, 7 }
  0x93   :  { %2869 = vmatprep.subr.bf16.mxu1 %v4526_v47 }
  0x94   :  { %2940 = vmatpush1.bf16.msra.mxu0 %v2939_v56  ;;  %v3816_v56 = vpack.c.bf16 %v1116_v31, %v1109_v25  ;;  %v64_v31 = vsub.s32 0, %v63_v17  ;;  %v68_v32 = vsub.s32 1, %v63_v17  ;;  %v1166_v17 = vsub.f32 %v3697_v12, %v1165_v38 }
  0x95   :  { %2941 = vmatprep.subr.bf16.mxu0 %v4526_v47 }
  0x96   :  { %2871 = vmatpush1.bf16.msra.mxu1 %v3772_v30 }
  0x97   :  { %2872 = vmatprep.subr.bf16.mxu1 %v4526_v47 }
  0x98   :  { %2943 = vmatpush1.bf16.msra.mxu0 %v2942_v2  ;;  %v1123_v2 = vand.u32 4294901760, %v3646_v15 }
  0x99   :  { %2944 = vmatprep.subr.bf16.mxu0 %v4526_v47 }
  0x9a   :  { %2874 = vmatpush1.bf16.msra.mxu1 %v3783_v50  ;;  %v1124_v5 = vsub.f32 %v3646_v15, %v1123_v2  ;;  %v60_v15 = vld [vmem:[%s4517_s2] sm:$0x3] }
  0x9b   :  { %2875 = vmatprep.subr.bf16.mxu1 %v4526_v47  ;;  %v65_v8 = vrot.slane %v60_v15, %v64_v31  ;;  %v69_v51 = vrot.slane %v60_v15, %v68_v32 }
  0x9c   :  { %2946 = vmatpush1.bf16.msra.mxu0 %v2945_v54  ;;  %v3824_v54 = vpack.c.bf16 %v1130_v6, %v1123_v2  ;;  %v1125_v60 = vand.u32 4294901760, %v1124_v5  ;;  %v1172_v2 = vand.u32 4294901760, %v3699_v13 }
  0x9d   :  { %2947 = vmatprep.subr.bf16.mxu0 %v4526_v47 }
  0x9e   :  { %2877 = vmatpush1.bf16.msra.mxu1 %v3790_v62  ;;  %v3836_v16 = vpack.c.bf16 %v1132_v1, %v1125_v60  ;;  %v3851_v36 = vpack.c.bf16 %v1172_v2, %v1165_v38  ;;  %v1173_v60 = vsub.f32 %v3699_v13, %v1172_v2  ;;  %v1193_v2 = vand.u32 4294901760, %v3731_v45 }
  0x9f   :  { %2878 = vmatprep.subr.bf16.mxu1 %v4526_v47 }
  0xa0   :  { %2949 = vmatpush1.bf16.msra.mxu0 %v2948_v33  ;;  %v1144_v33 = vand.u32 4294901760, %v3665_v26  ;;  %v1174_v22 = vand.u32 4294901760, %v1173_v60 }
  0xa1   :  { %2950 = vmatprep.subr.bf16.mxu0 %v4526_v47 }
  0xa2   :  { %2880 = vmatpush1.bf16.msra.mxu1 %v3799_v19  ;;  %v3832_v18 = vpack.c.bf16 %v1144_v33, %v1137_v52  ;;  %v1145_v25 = vsub.f32 %v3665_v26, %v1144_v33  ;;  %v1159_v26 = vsub.f32 %v3682_v41, %v1158_v27  ;;  %v1179_v52 = vand.u32 4294901760, %v3726_v39 }
  0xa3   :  { %2881 = vmatprep.subr.bf16.mxu1 %v4526_v47  ;;  %v1186_v33 = vand.u32 4294901760, %v3728_v43  ;;  %v1167_v27 = vand.u32 4294901760, %v1166_v17 }
  0xa4   :  { %2952 = vmatpush1.bf16.msra.mxu0 %v2951_v4  ;;  %v3828_v4 = vpack.c.bf16 %v1118_v29, %v1111_v48  ;;  %v1146_v37 = vand.u32 4294901760, %v1145_v25  ;;  %v1153_v48 = vand.u32 4294901760, %v1152_v21  ;;  %v1160_v29 = vand.u32 4294901760, %v1159_v26 }
  0xa5   :  { %2989 = vmatprep.subr.bf16.mxu0 %v4526_v47  ;;  %v3861_v1 = vpack.c.bf16 %v1186_v33, %v1179_v52  ;;  %v1200_v26 = vand.u32 4294901760, %v3733_v46 }
  0xa6   :  { %v3847_v6 = vpack.c.bf16 %v1146_v37, %v1139_v55  ;;  %v3855_v14 = vpack.c.bf16 %v1160_v29, %v1153_v48  ;;  %v3869_v55 = vpack.c.bf16 %v1174_v22, %v1167_v27  ;;  %v1187_v48 = vsub.f32 %v3728_v43, %v1186_v33 }
  0xa8   :  { %v1188_v22 = vand.u32 4294901760, %v1187_v48 }
 0x14a   :  { %v718_v5 = vpop.f32.mrb[0].mxu0 }
 0x14b   :  { %v3859_v40 = vadd.f32 %v718_v5, %v65_v8  ;;  %v720_v41 = vpop.f32.mrb[1].mxu0  ;;  %v1180_v8 = vsub.f32 %v3726_v39, %v1179_v52  ;;  %v3879_v5 = vpack.c.bf16 %v1200_v26, %v1193_v2 }
 0x14c   :  { %v3863_v24 = vadd.f32 %v720_v41, %v69_v51 }
 0x14d   :  { %v4529_v25 = vand.u32 2147483647, %v3859_v40  ;;  %v726_v31 = vand.u32 2139095040, %v3859_v40  ;;  %v1181_v17 = vand.u32 4294901760, %v1180_v8  ;;  %vm725_vm15 = vcmp.lt.s32.totalorder %v3859_v40, 0 }
 0x14e   :  { %v4528_v15 = vand.u32 2147483647, %v3863_v24  ;;  %v830_v32 = vand.u32 2139095040, %v3863_v24 }
 0x14f   :  { %v727_v12 = vshrl.u32 %v726_v31, 23  ;;  %v730_v13 = vand.u32 8388607, %v4529_v25  ;;  %v3882_v31 = vsub.f32 %v3731_v45, %v1193_v2  ;;  %v3887_v39 = vpack.c.bf16 %v1188_v22, %v1181_v17 }
 0x150   :  { %v831_v37 = vshrl.u32 %v830_v32, 23  ;;  %v834_v38 = vand.u32 8388607, %v4528_v15  ;;  %v3885_v32 = vsub.f32 %v3733_v46, %v1200_v26  ;;  %v3277_v2 = vmov 683565275  }
 0x151   :  { %v2426_v21 = vadd.s32 4294967169, %v727_v12  ;;  %v731_v60 = vor.u32 8388608, %v730_v13  ;;  %v3280_v22 = vmov 2102212464  }
 0x152   :  { %v2430_v51 = vadd.s32 4294967169, %v831_v37  ;;  %v835_v41 = vor.u32 8388608, %v834_v38 }
 0x153   :  { %v733_v29 = vadd.s32 1, %v2426_v21  ;;  %v3889_v37 = vshll.u32 %v731_v60, 8  ;;  %v3281_v60 = vmov 920167782   ;;  %v3282_v21 = vmov 1326507024  }
 0x154   :  { %v837_v27 = vadd.s32 1, %v2430_v51  ;;  %v3893_v38 = vshll.u32 %v835_v41, 8  ;;  %v3278_v51 = vmov 2475754826  }
 0x155   :  { %vm734_vm1 = vcmp.gt.s32.totalorder %v733_v29, 0 }
 0x156   :  { %v735_v12 = vsel %vm734_vm1, %v733_v29, 0  ;;  %vm838_vm2 = vcmp.gt.s32.totalorder %v837_v27, 0  ;;  %v3279_v29 = vmov 2131351028  }
 0x157   :  { %v736_v43 = vshrl.u32 %v735_v12, 5  ;;  %v737_v52 = vand.u32 31, %v735_v12  ;;  %v839_v33 = vsel %vm838_vm2, %v837_v27, 0  ;;  %vm829_vm2 = vcmp.lt.s32.totalorder %v3863_v24, 0 }
 0x158   :  { %v3891_v13 = vshrl.u32 %v839_v33, 5  ;;  %v841_v46 = vand.u32 31, %v839_v33 }
 0x159   :  { %v738_v45 = vsub.s32 32, %v737_v52  ;;  %v740_v8 = vshll.u32 %v3277_v2, %v737_v52  ;;  %v743_v48 = vshll.u32 %v3278_v51, %v737_v52  ;;  %v746_v17 = vshll.u32 %v3279_v29, %v737_v52 }
 0x15a   :  { %v749_v27 = vshll.u32 %v3280_v22, %v737_v52  ;;  %v752_v12 = vshll.u32 %v3281_v60, %v737_v52  ;;  %vm755_vm3 = vcmp.lt.s32.totalorder %v736_v43, 1  ;;  %vm756_vm4 = vcmp.lt.s32.totalorder %v736_v43, 2 }
 0x15b   :  { %v741_v0 = vshrl.u32 %v3278_v51, %v738_v45  ;;  %v744_v47 = vshrl.u32 %v3279_v29, %v738_v45  ;;  %v747_v41 = vshrl.u32 %v3280_v22, %v738_v45  ;;  %v739_v15 = vshrl.u32 %v3277_v2, %v738_v45 }
 0x15c   :  { %v750_v25 = vshrl.u32 %v3281_v60, %v738_v45  ;;  %v753_v19 = vshrl.u32 %v3282_v21, %v738_v45  ;;  %v842_v50 = vsub.s32 32, %v841_v46  ;;  %vm757_vm5 = vcmp.lt.s32.totalorder %v736_v43, 3 }
 0x15d   :  { %v742_v33 = vor.u32 %v741_v0, %v740_v8  ;;  %v745_v62 = vor.u32 %v744_v47, %v743_v48  ;;  %v748_v26 = vor.u32 %v747_v41, %v746_v17  ;;  %vm758_vm6 = vcmp.lt.s32.totalorder %v736_v43, 4 }
 0x15e   :  { %v751_v30 = vor.u32 %v750_v25, %v749_v27  ;;  %v754_v49 = vor.u32 %v753_v19, %v752_v12  ;;  %v844_v45 = vshll.u32 %v3277_v2, %v841_v46  ;;  %v845_v47 = vshrl.u32 %v3278_v51, %v842_v50 }
 0x15f   :  { %v759_v57 = vsel %vm755_vm3, %v739_v15, %v742_v33  ;;  %v760_v52 = vsel %vm758_vm6, %v748_v26, 2102212464  ;;  %v763_v20 = vsel %vm755_vm3, %v742_v33, %v745_v62  ;;  %v767_v10 = vsel %vm755_vm3, %v745_v62, %v748_v26 }
 0x160   :  { %v761_v35 = vsel %vm757_vm5, %v745_v62, %v760_v52  ;;  %v764_v9 = vsel %vm758_vm6, %v751_v30, 920167782  ;;  %v768_v11 = vsel %vm758_vm6, %v754_v49, 1326507024  ;;  %v847_v8 = vshll.u32 %v3278_v51, %v841_v46 }
 0x161   :  { %v765_v59 = vsel %vm757_vm5, %v748_v26, %v764_v9  ;;  %v769_v0 = vsel %vm757_vm5, %v751_v30, %v768_v11  ;;  %v762_v25 = vsel %vm756_vm4, %v759_v57, %v761_v35  ;;  %v848_v15 = vshrl.u32 %v3279_v29, %v842_v50 }
 0x162   :  { %v766_v19 = vsel %vm756_vm4, %v763_v20, %v765_v59  ;;  %v770_v48 = vsel %vm756_vm4, %v767_v10, %v769_v0  ;;  %v846_v49 = vor.u32 %v845_v47, %v844_v45  ;;  %v850_v11 = vshll.u32 %v3279_v29, %v841_v46 }
 0x163   :  { %v3904_v17 = vmul.u32.u64.low %v3889_v37, %v770_v48  ;;  %v3905_v27 = vmul.u32.u64.high %v3889_v37, %v770_v48, %v3904_v17  ;;  %v3908_v62 = vmul.u32.u64.low %v3889_v37, %v766_v19  ;;  %v3909_v12 = vmul.u32.u64.high %v3889_v37, %v766_v19, %v3908_v62 }
 0x164   :  { %v849_v9 = vor.u32 %v848_v15, %v847_v8  ;;  %v851_v30 = vshrl.u32 %v3280_v22, %v842_v50  ;;  %v843_v26 = vshrl.u32 %v3277_v2, %v842_v50  ;;  %v853_v51 = vshll.u32 %v3280_v22, %v841_v46 }
 0x165   :  { %v854_v35 = vshrl.u32 %v3281_v60, %v842_v50  ;;  %v857_v57 = vshrl.u32 %v3282_v21, %v842_v50  ;;  %v778_v59 = vmul.u32 %v3889_v37, %v762_v25  ;;  %v856_v20 = vshll.u32 %v3281_v60, %v841_v46 }
 0x166   :  { %v852_v10 = vor.u32 %v851_v30, %v850_v11  ;;  %vm859_vm7 = vcmp.lt.s32.totalorder %v3891_v13, 1  ;;  %vm780_vm8 = vc.u32 %v3905_v27, %v3908_v62  ;;  %v781_v43 = vadd.s32 1, %v3909_v12 }
 0x167   :  { %v855_v41 = vor.u32 %v854_v35, %v853_v51  ;;  %vm860_vm9 = vcmp.lt.s32.totalorder %v3891_v13, 2  ;;  %v858_v33 = vor.u32 %v857_v57, %v856_v20  ;;  %vm861_vm10 = vcmp.lt.s32.totalorder %v3891_v13, 3 }
 0x168   :  { %vm862_vm11 = vcmp.lt.s32.totalorder %v3891_v13, 4  ;;  %v867_v2 = vsel %vm859_vm7, %v846_v49, %v849_v9  ;;  %v782_v50 = vsel %vm780_vm8, %v781_v43, %v3909_v12  ;;  %v871_v46 = vsel %vm859_vm7, %v849_v9, %v852_v10 }
 0x169   :  { %v864_v37 = vsel %vm862_vm11, %v852_v10, 2102212464  ;;  %v868_v21 = vsel %vm862_vm11, %v855_v41, 920167782  ;;  %v783_v29 = vadd.s32 %v782_v50, %v778_v59  ;;  %v863_v22 = vsel %vm859_vm7, %v843_v26, %v846_v49 }
 0x16a   :  { %v869_v60 = vsel %vm861_vm10, %v852_v10, %v868_v21  ;;  %v872_v52 = vsel %vm862_vm11, %v858_v33, 1326507024  ;;  %v865_v45 = vsel %vm861_vm10, %v849_v9, %v864_v37  ;;  %v4591_v8 = vand.u32 4294901760, %v3882_v31 }
 0x16b   :  { %v870_v0 = vsel %vm860_vm9, %v867_v2, %v869_v60  ;;  %v873_v47 = vsel %vm861_vm10, %v855_v41, %v872_v52  ;;  %v4592_v25 = vand.u32 4294901760, %v3885_v32  ;;  %v784_v48 = vadd.s32 536870912, %v783_v29 }
 0x16c   :  { %v874_v15 = vsel %vm860_vm9, %v871_v46, %v873_v47  ;;  %v3930_v17 = vmul.u32.u64.low %v3893_v38, %v870_v0  ;;  %v3931_v12 = vmul.u32.u64.high %v3893_v38, %v870_v0, %v3930_v17  ;;  %v866_v31 = vsel %vm860_vm9, %v863_v22, %v865_v45 }
 0x16d   :  { %v3925_v19 = vpack.c.bf16 %v4592_v25, %v4591_v8  ;;  %v3934_v49 = vmul.u32.u64.low %v3893_v38, %v874_v15  ;;  %v3935_v9 = vmul.u32.u64.high %v3893_v38, %v874_v15, %v3934_v49  ;;  %v785_v11 = vshrl.u32 %v784_v48, 30 }
 0x16e   :  { %v885_v32 = vadd.s32 1, %v3931_v12  ;;  %v882_v26 = vmul.u32 %v3893_v38, %v866_v31  ;;  %v779_v21 = vadd.s32 %v3908_v62, %v3905_v27  ;;  %vm815_vm7 = vweird.f32 %v3859_v40 }
 0x16f   :  { %v786_v30 = vshll.u32 %v785_v11, 30  ;;  %vm884_vm12 = vc.u32 %v3935_v9, %v3930_v17  ;;  %v883_v49 = vadd.s32 %v3930_v17, %v3935_v9  ;;  %v809_v62 = vsub.s32 4, %v785_v11 }
 0x170   :  { %v886_v35 = vsel %vm884_vm12, %v885_v32, %v3931_v12  ;;  %vm919_vm11 = vweird.f32 %v3863_v24  ;;  %vm2381_vm12 = vcmask 60416  }
 0x171   :  { %v787_v51 = vsub.s32 %v783_v29, %v786_v30  ;;  %v887_v57 = vadd.s32 %v886_v35, %v882_v26 }
 0x173   :  { %v789_v59 = vsub.s32 0, %v787_v51  ;;  %v888_v10 = vadd.s32 536870912, %v887_v57 }
 0x175   :  { %v2427_v20 = vmin.u32 %v789_v59, %v787_v51  ;;  %v889_v43 = vshrl.u32 %v888_v10, 30  ;;  %v4593_v10 = vand.u32 2147483647, %v3859_v40 }
 0x177   :  { %v791_v41 = vclz %v2427_v20  ;;  %v890_v33 = vshll.u32 %v889_v43, 30  ;;  %vm724_vm1 = vcmp.le.f32.partialorder %v4593_v10, 0.7853982 }
 0x179   :  { %v2428_v2 = vadd.s32 4294967294, %v791_v41  ;;  %v891_v13 = vsub.s32 %v887_v57, %v890_v33  ;;  %v810_v41 = vsel %vm725_vm15, %v809_v62, %v785_v11 }
 0x17a   :  { %v812_v9 = vsel %vm724_vm1, 0, %v810_v41 }
 0x17b   :  { %vm2429_vm13 = vcmp.lt.s32.totalorder %v2428_v2, 0  ;;  %v893_v37 = vsub.s32 0, %v891_v13 }
 0x17c   :  { %v794_v50 = vsel %vm2429_vm13, 0, %v2428_v2 }
 0x17d   :  { %v795_v38 = vsub.s32 32, %v794_v50  ;;  %v799_v46 = vsub.s32 4294967266, %v794_v50  ;;  %v2431_v22 = vmin.u32 %v893_v37, %v891_v13  ;;  %v796_v29 = vshll.u32 %v787_v51, %v794_v50 }
 0x17e   :  { %v913_v37 = vsub.s32 4, %v889_v43 }
 0x17f   :  { %v797_v60 = vshrl.u32 %v779_v21, %v795_v38  ;;  %v800_v52 = vadd.s32 127, %v799_v46  ;;  %v895_v45 = vclz %v2431_v22  ;;  %v816_v21 = vadd.s32 3, %v812_v9 }
 0x180   :  { %v4594_v46 = vand.u32 2147483647, %v3863_v24  ;;  %v4595_v9 = vmov 0.0|0.0  }
 0x181   :  { %v798_v0 = vor.u32 %v797_v60, %v796_v29  ;;  %v801_v47 = vshll.u32 %v800_v52, 23  ;;  %v2432_v8 = vadd.s32 4294967294, %v895_v45  ;;  %v914_v29 = vsel %vm829_vm2, %v913_v37, %v889_v43  ;;  %v4001_v37 = vld [vmem:[#allocation2 + $0x10] sm:$0xff] }
 0x182   :  { %vm828_vm3 = vcmp.le.f32.partialorder %v4594_v46, 0.7853982  ;;  %v817_v60 = vand.u32 3, %v816_v21  ;;  %v4009_v21 = vld [vmem:[#allocation2 + $0x18] sm:$0xff]  ;;  %v4016_v46 = vld [vmem:[#allocation2 + $0x28] sm:$0xff] }
 0x183   :  { %v802_v25 = vor.u32 4788187, %v801_v47  ;;  %vm2433_vm14 = vcmp.lt.s32.totalorder %v2432_v8, 0  ;;  %v805_v15 = vcvt.s32.f32 %v798_v0  ;;  %v916_v45 = vsel %vm828_vm3, 0, %v914_v29 }
 0x184   :  { %v898_v12 = vsel %vm2433_vm14, 0, %v2432_v8  ;;  %vm822_vm4 = vcmp.eq.s32.totalorder %v817_v60, 2  ;;  %vm819_vm5 = vcmp.eq.s32.totalorder %v817_v60, 0  ;;  %vm818_vm6 = vcmp.lt.s32.totalorder %v817_v60, 2 }
 0x185   :  { %v803_v48 = vand.u32 2147483647, %v802_v25  ;;  %v899_v31 = vsub.s32 32, %v898_v12  ;;  %v903_v30 = vsub.s32 4294967266, %v898_v12  ;;  %v900_v32 = vshll.u32 %v891_v13, %v898_v12 }
 0x186   :  { %v920_v25 = vadd.s32 3, %v916_v45  ;;  %v4036_v45 = vld [vmem:[#allocation2 + $0x30] sm:$0xff] }
 0x187   :  { %v806_v27 = vmul.f32 %v805_v15, %v803_v48  ;;  %v901_v26 = vshrl.u32 %v883_v49, %v899_v31  ;;  %v904_v51 = vadd.s32 127, %v903_v30 }
 0x188   :  { %v921_v49 = vand.u32 3, %v920_v25 }
 0x189   :  { %v807_v35 = vxor.u32 2147483648, %v806_v27  ;;  %v902_v57 = vor.u32 %v901_v26, %v900_v32  ;;  %v905_v59 = vshll.u32 %v904_v51, 23 }
 0x18a   :  { %vm926_vm8 = vcmp.eq.s32.totalorder %v921_v49, 2  ;;  %vm923_vm9 = vcmp.eq.s32.totalorder %v921_v49, 0  ;;  %vm922_vm10 = vcmp.lt.s32.totalorder %v921_v49, 2  ;;  %v1221_v49 = vand.u32 4294901760, %v3766_v61 }
 0x18b   :  { %v808_v20 = vsel %vm725_vm15, %v807_v35, %v806_v27  ;;  %v906_v17 = vor.u32 4788187, %v905_v59  ;;  %v909_v13 = vcvt.s32.f32 %v902_v57 }
 0x18c   :  { %v811_v33 = vsel %vm724_vm1, %v3859_v40, %v808_v20 }
 0x18d   :  { %3237 = vcosq.f32 %v811_v33  ;;  %v907_v2 = vand.u32 2147483647, %v906_v17 }
 0x18e   :  { %3239 = vsinq.f32 %v811_v33 }
 0x18f   :  { %v910_v50 = vmul.f32 %v909_v13, %v907_v2 }
 0x191   :  { %v911_v38 = vxor.u32 2147483648, %v910_v50 }
 0x193   :  { %v912_v22 = vsel %vm829_vm2, %v911_v38, %v910_v50  ;;  %v3988_v50 = vld [vmem:[#allocation2 + $0x8] sm:$0xff]  ;;  %v4014_v38 = vld [vmem:[#allocation2 + $0x20] sm:$0xff] }
 0x194   :  { %v915_v11 = vsel %vm828_vm3, %v3863_v24, %v912_v22  ;;  %v4574_v60 = vand.u32 4294901760, %v4014_v38 }
 0x195   :  { %3241 = vcosq.f32 %v915_v11 }
 0x196   :  { %3243 = vsinq.f32 %v915_v11 }
 0x197   :  { %v3238_v52 = vpop.eup %3237 }
 0x198   :  { %v3240_v0 = vpop.eup %3239  ;;  %v823_v47 = vxor.u32 2147483648, %v3238_v52 }
 0x199   :  { %v820_v8 = vxor.u32 2147483648, %v3240_v0 }
 0x19a   :  { %v824_v48 = vsel %vm822_vm4, %v823_v47, %v3240_v0  ;;  %v1207_v47 = vand.u32 4294901760, %v3747_v58 }
 0x19b   :  { %v821_v15 = vsel %vm819_vm5, %v3238_v52, %v820_v8  ;;  %v4570_v52 = vand.u32 4294901760, %v4016_v46  ;;  %v4050_v8 = vsub.f32 %v4014_v38, %v4574_v60 }
 0x19c   :  { %v825_v12 = vsel %vm818_vm6, %v821_v15, %v824_v48  ;;  %v4057_v48 = vld [vmem:[#allocation2 + $0x38] sm:$0xff]  ;;  %v4567_v15 = vand.u32 4294901760, %v4036_v45 }
 0x19d   :  { %v826_v43 = vsel %vm815_vm7, nan, %v825_v12  ;;  %v4055_v25 = vsub.f32 %v4016_v46, %v4570_v52 }
 0x19e   :  { %v3954_v62 = vand.u32 4294901760, %v826_v43 }
 0x19f   :  { %v3242_v31 = vpop.eup %3241 }
 0x1a0   :  { %v3244_v30 = vpop.eup %3243  ;;  %v927_v27 = vxor.u32 2147483648, %v3242_v31  ;;  %v3958_v57 = vsub.f32 %v826_v43, %v3954_v62 }
 0x1a1   :  { %v924_v32 = vxor.u32 2147483648, %v3244_v30 }
 0x1a2   :  { %v928_v26 = vsel %vm926_vm8, %v927_v27, %v3244_v30  ;;  %v4560_v20 = vand.u32 4294901760, %v3958_v57  ;;  %v4065_v30 = vld [vmem:[#allocation2 + $0x40] sm:$0xff]  ;;  %v4067_v27 = vld [vmem:[#allocation2 + $0x48] sm:$0xff] }
 0x1a3   :  { %v925_v51 = vsel %vm923_vm9, %v3242_v31, %v924_v32  ;;  %v1228_v31 = vand.u32 4294901760, %v3768_v28 }
 0x1a4   :  { %v929_v35 = vsel %vm922_vm10, %v925_v51, %v928_v26  ;;  %v1071_v24 = vsub.f32 %v3958_v57, %v4560_v20  ;;  %v1208_v26 = vsub.f32 %v3747_v58, %v1207_v47  ;;  %v4563_v51 = vand.u32 4294901760, %v4057_v48 }
 0x1a5   :  { %v930_v40 = vsel %vm919_vm11, nan, %v929_v35  ;;  %v4077_v35 = vsub.f32 %v4036_v45, %v4567_v15  ;;  %v4557_v58 = vand.u32 4294901760, %v4050_v8 }
 0x1a6   :  { %v972_v59 = vsel %vm72_vm0, %v930_v40, 0  ;;  %v1072_v13 = vand.u32 4294901760, %v1071_v24  ;;  %v4558_v24 = vand.u32 4294901760, %v4055_v25  ;;  %vm3283_vm0 = vmmov 0  }
 0x1a7   :  { %v3961_v10 = vand.u32 4294901760, %v972_v59 }
 0x1a9   :  { %v3965_v41 = vsub.f32 %v972_v59, %v3961_v10 }
 0x1ab   :  { %1384 = vmatprep.mubr.f32.mxu0 %v3965_v41  ;;  %v4569_v33 = vand.u32 4294901760, %v3965_v41 }
 0x1ac   :  { %1387 = vmatmul.mubr.f32.vlgmr.msra.gmra.mrb[2].mxu0 %v3958_v57 }
 0x1ad   :  { %2991 = vmatpush1.bf16.msra.mxu0 %v3797_v63  ;;  %1629 = vmatprep.mubr.f32.mxu0 %v3961_v10  ;;  %v1065_v17 = vsub.f32 %v3965_v41, %v4569_v33  ;;  %v3985_v63 = vld [vmem:[#allocation2] sm:$0xff] }
 0x1ae   :  { %2992 = vmatprep.subr.bf16.mxu0 %v4595_v9 }
 0x1af   :  { %v1066_v2 = vand.u32 4294901760, %v1065_v17 }
 0x1b1   :  { %2994 = vmatpush1.bf16.msra.mxu0 %v3804_v23  ;;  %1067 = vmatprep.mubr.f32.mxu1 %v1066_v2  ;;  %v1733_v23 = vand.u32 4294901760, %v3985_v63  ;;  %v4095_v2 = vsub.f32 %v4057_v48, %v4563_v51 }
 0x1b2   :  { %1073 = vmatmul.mubr.f32.vlgmr.msra.gmra.mrb[0].mxu1 %v1072_v13  ;;  %2995 = vmatprep.subr.bf16.mxu0 %v4595_v9  ;;  %v4562_v13 = vand.u32 4294901760, %v4065_v30 }
 0x1b3   :  { %2883 = vmatpush1.bf16.msra.mxu1 %v3812_v44  ;;  %1263 = vmatprep.mubr.f32.mxu1 %v3961_v10  ;;  %v1736_v44 = vand.u32 4294901760, %v3988_v50 }
 0x1b4   :  { %2884 = vmatprep.subr.bf16.mxu1 %v4595_v9 }
 0x1b5   :  { %2997 = vmatpush1.bf16.msra.mxu0 %v3816_v56  ;;  %v3999_v56 = vsub.f32 %v3985_v63, %v1733_v23 }
 0x1b6   :  { %2998 = vmatprep.subr.bf16.mxu0 %v4595_v9 }
 0x1b7   :  { %2886 = vmatpush1.bf16.msra.mxu1 %v3820_v7  ;;  %v4007_v7 = vsub.f32 %v3988_v50, %v1736_v44  ;;  %v4559_v22 = vand.u32 4294901760, %v3999_v56 }
 0x1b8   :  { %2887 = vmatprep.subr.bf16.mxu1 %v4595_v9 }
 0x1b9   :  { %3000 = vmatpush1.bf16.msra.mxu0 %v3824_v54  ;;  %v1739_v54 = vand.u32 4294901760, %v4001_v37 }
 0x1ba   :  { %3001 = vmatprep.subr.bf16.mxu0 %v4595_v9 }
 0x1bb   :  { %2889 = vmatpush1.bf16.msra.mxu1 %v3828_v4  ;;  %v1742_v4 = vand.u32 4294901760, %v4009_v21  ;;  %v4025_v29 = vsub.f32 %v4001_v37, %v1739_v54  ;;  %v4597_v37 = vand.u32 4294901760, %v4014_v38  ;;  %v4602_v38 = vand.u32 4294901760, %v4057_v48 }
 0x1bc   :  { %2890 = vmatprep.subr.bf16.mxu1 %v4595_v9  ;;  %v4605_v48 = vand.u32 4294901760, %v4067_v27 }
 0x1bd   :  { %3003 = vmatpush1.bf16.msra.mxu0 %v3832_v18  ;;  %v4556_v18 = vand.u32 4294901760, %v4007_v7  ;;  %v4032_v11 = vsub.f32 %v4009_v21, %v1742_v4  ;;  %v4555_v32 = vand.u32 4294901760, %v4025_v29  ;;  %v4598_v21 = vand.u32 4294901760, %v4016_v46 }
 0x1be   :  { %3004 = vmatprep.subr.bf16.mxu0 %v4595_v9 }
 0x1bf   :  { %2892 = vmatpush1.bf16.msra.mxu1 %v3836_v16  ;;  %v1827_v16 = vsub.f32 %v3999_v56, %v4559_v22  ;;  %v1834_v0 = vsub.f32 %v4007_v7, %v4556_v18  ;;  %v1841_v59 = vsub.f32 %v4025_v29, %v4555_v32  ;;  %v3020_v32 = vpack.c.bf16 %v1228_v31, %v1221_v49 }
 0x1c0   :  { %2893 = vmatprep.subr.bf16.mxu1 %v4595_v9  ;;  %v4112_v18 = vsub.f32 %v4065_v30, %v4562_v13  ;;  %v1222_v22 = vsub.f32 %v3766_v61, %v1221_v49  ;;  %v1235_v61 = vand.u32 4294901760, %v3777_v34  ;;  %v1229_v49 = vsub.f32 %v3768_v28, %v1228_v31 }
 0x1c1   :  { %3006 = vmatpush1.bf16.msra.mxu0 %v3840_v53  ;;  %v1214_v53 = vand.u32 4294901760, %v3751_v3  ;;  %v1828_v12 = vand.u32 4294901760, %v1827_v16  ;;  %v1835_v43 = vand.u32 4294901760, %v1834_v0  ;;  %v4561_v16 = vand.u32 4294901760, %v4067_v27  ;;  %v4100_v0 = vld [vmem:[#allocation2 + $0x50] sm:$0xff] }
 0x1c2   :  { %3007 = vmatprep.subr.bf16.mxu0 %v4595_v9  ;;  %v4566_v20 = vand.u32 4294901760, %v4100_v0  ;;  %v1242_v31 = vand.u32 4294901760, %v3779_v42  ;;  %v1223_v15 = vand.u32 4294901760, %v1222_v22  ;;  %v1230_v52 = vand.u32 4294901760, %v1229_v49 }
 0x1c3   :  { %2895 = vmatpush1.bf16.msra.mxu1 %v3847_v6  ;;  %v4554_v6 = vand.u32 4294901760, %v4032_v11  ;;  %v4079_v40 = vpack.c.bf16 %v1835_v43, %v1828_v12  ;;  %v1215_v17 = vsub.f32 %v3751_v3, %v1214_v53  ;;  %v1842_v12 = vand.u32 4294901760, %v1841_v59 }
 0x1c4   :  { %2896 = vmatprep.subr.bf16.mxu1 %v4595_v9  ;;  %v1862_v3 = vsub.f32 %v4055_v25, %v4558_v24  ;;  %v4117_v59 = vsub.f32 %v4067_v27, %v4561_v16  ;;  %v4564_v16 = vand.u32 4294901760, %v4095_v2  ;;  %v1236_v49 = vsub.f32 %v3777_v34, %v1235_v61  ;;  %v4609_v27 = vld [vmem:[#allocation8_spill] sm:$0xff] }
 0x1c5   :  { %3009 = vmatpush1.bf16.msra.mxu0 %v3851_v36  ;;  %v1848_v36 = vsub.f32 %v4032_v11, %v4554_v6  ;;  %v3017_v6 = vpack.c.bf16 %v1214_v53, %v1207_v47  ;;  %v4565_v47 = vand.u32 4294901760, %v4077_v35  ;;  %v1209_v53 = vand.u32 4294901760, %v1208_v26 }
 0x1c6   :  { %3010 = vmatprep.subr.bf16.mxu0 %v4595_v9  ;;  %v1216_v13 = vand.u32 4294901760, %v1215_v17  ;;  %v4146_v26 = vsub.f32 %v4100_v0, %v4566_v20  ;;  %v4572_v28 = vand.u32 4294901760, %v4117_v59  ;;  %v3023_v34 = vpack.c.bf16 %v1242_v31, %v1235_v61 }
 0x1c7   :  { %2898 = vmatpush1.bf16.msra.mxu1 %v3855_v14  ;;  %v1849_v43 = vand.u32 4294901760, %v1848_v36  ;;  %v1855_v14 = vsub.f32 %v4050_v8, %v4557_v58  ;;  %v4119_v36 = vld [vmem:[#allocation2 + $0x58] sm:$0xff]  ;;  %v1237_v61 = vand.u32 4294901760, %v1236_v49 }
 0x1c8   :  { %2899 = vmatprep.subr.bf16.mxu1 %v4595_v9  ;;  %v4568_v51 = vand.u32 4294901760, %v4119_v36  ;;  %v2909_v20 = vpack.c.bf16 %v1216_v13, %v1209_v53 }
 0x1c9   :  { %3012 = vmatpush1.bf16.msra.mxu0 %v3861_v1  ;;  %v4122_v58 = vpack.c.bf16 %v1849_v43, %v1842_v12  ;;  %v1856_v24 = vand.u32 4294901760, %v1855_v14  ;;  %v1863_v1 = vand.u32 4294901760, %v1862_v3  ;;  %v4131_v12 = vld [vmem:[#allocation2 + $0x60] sm:$0xff]  ;;  %v4133_v43 = vld [vmem:[#allocation2 + $0x68] sm:$0xff]  ;;  %v4571_v3 = vand.u32 4294901760, %v4112_v18 }
 0x1ca   :  { %3013 = vmatprep.subr.bf16.mxu0 %v4595_v9  ;;  %v4155_v17 = vsub.f32 %v4119_v36, %v4568_v51  ;;  %v4164_v51 = vld [vmem:[#allocation2 + $0x70] sm:$0xff] }
 0x1cb   :  { %2901 = vmatpush1.bf16.msra.mxu1 %v3869_v55  ;;  %v4135_v14 = vpack.c.bf16 %v1863_v1, %v1856_v24  ;;  %v1869_v55 = vsub.f32 %v4077_v35, %v4565_v47  ;;  %v1876_v24 = vsub.f32 %v4095_v2, %v4564_v16  ;;  %v4573_v1 = vand.u32 4294901760, %v4131_v12 }
 0x1cc   :  { %2902 = vmatprep.subr.bf16.mxu1 %v4595_v9  ;;  %v4575_v16 = vand.u32 4294901760, %v4133_v43  ;;  %v1883_v33 = vsub.f32 %v4112_v18, %v4571_v3  ;;  %v1775_v60 = vand.u32 4294901760, %v4164_v51 }
 0x1cd   :  { %3015 = vmatpush1.bf16.msra.mxu0 %v3879_v5  ;;  %v1870_v5 = vand.u32 4294901760, %v1869_v55  ;;  %v1877_v47 = vand.u32 4294901760, %v1876_v24  ;;  %v4166_v55 = vld [vmem:[#allocation2 + $0x78] sm:$0xff]  ;;  %v4177_v24 = vsub.f32 %v4131_v12, %v4573_v1  ;;  %v1243_v1 = vsub.f32 %v3779_v42, %v1242_v31 }
 0x1ce   :  { %3016 = vmatprep.subr.bf16.mxu0 %v4595_v9  ;;  %v4182_v22 = vsub.f32 %v4133_v43, %v4575_v16  ;;  %v1884_v53 = vand.u32 4294901760, %v1883_v33  ;;  %v4578_v16 = vand.u32 4294901760, %v4166_v55  ;;  %v4206_v42 = vsub.f32 %v4164_v51, %v1775_v60  ;;  %v4616_v51 = vld [vmem:[#allocation12_spill] sm:$0xff] }
 0x1cf   :  { %2904 = vmatpush1.bf16.msra.mxu1 %v3887_v39  ;;  %v1890_v39 = vsub.f32 %v4117_v59, %v4572_v28  ;;  %v4184_v13 = vpack.c.bf16 %v1877_v47, %v1870_v5  ;;  %v4577_v28 = vand.u32 4294901760, %v4146_v26  ;;  %v1244_v31 = vand.u32 4294901760, %v1243_v1 }
 0x1d0   :  { %2905 = vmatprep.subr.bf16.mxu1 %v4595_v9  ;;  %v4211_v5 = vsub.f32 %v4166_v55, %v4578_v16  ;;  %v1924_v1 = vand.u32 4294901760, %v4206_v42 }
 0x1d1   :  { %3018 = vmatpush1.bf16.msra.mxu0 %v3017_v6  ;;  %v1891_v3 = vand.u32 4294901760, %v1890_v39  ;;  %v4576_v6 = vand.u32 4294901760, %v4155_v17  ;;  %v1897_v33 = vsub.f32 %v4146_v26, %v4577_v28 }
 0x1d2   :  { %3019 = vmatprep.subr.bf16.mxu0 %v4595_v9  ;;  %v1931_v49 = vand.u32 4294901760, %v4211_v5  ;;  %v1925_v63 = vsub.f32 %v4206_v42, %v1924_v1 }
 0x1d3   :  { %2907 = vmatpush1.bf16.msra.mxu1 %v3925_v19  ;;  %v4195_v47 = vpack.c.bf16 %v1891_v3, %v1884_v53  ;;  %v1904_v19 = vsub.f32 %v4155_v17, %v4576_v6  ;;  %v1898_v3 = vand.u32 4294901760, %v1897_v33  ;;  %v1910_v53 = vand.u32 4294901760, %v4177_v24 }
 0x1d4   :  { %2908 = vmatprep.subr.bf16.mxu1 %v4595_v9  ;;  %v1917_v6 = vand.u32 4294901760, %v4182_v22  ;;  %v1932_v50 = vsub.f32 %v4211_v5, %v1931_v49 }
 0x1d5   :  { %3021 = vmatpush1.bf16.msra.mxu0 %v3020_v32  ;;  %v1905_v39 = vand.u32 4294901760, %v1904_v19  ;;  %v2912_v32 = vpack.c.bf16 %v1230_v52, %v1223_v15  ;;  %v1911_v16 = vsub.f32 %v4177_v24, %v1910_v53  ;;  %v2915_v19 = vpack.c.bf16 %v1244_v31, %v1237_v61  ;;  %v4603_v31 = vld [vmem:[#allocation6_spill] sm:$0xff] }
 0x1d6   :  { %3022 = vmatprep.subr.bf16.mxu0 %v4595_v9  ;;  %v1918_v33 = vsub.f32 %v4182_v22, %v1917_v6  ;;  %v4601_v61 = vand.u32 4294901760, %v4036_v45  ;;  %v4604_v45 = vand.u32 4294901760, %v4065_v30 }
 0x1d7   :  { %2910 = vmatpush1.bf16.msra.mxu1 %v2909_v20  ;;  %v4217_v28 = vpack.c.bf16 %v1905_v39, %v1898_v3  ;;  %v4229_v20 = vpack.c.bf16 %v1736_v44, %v1733_v23  ;;  %v1912_v52 = vand.u32 4294901760, %v1911_v16  ;;  %v4249_v23 = vpack.c.bf16 %v1742_v4, %v1739_v54  ;;  %v4599_v4 = vld [vmem:[#allocation5_spill] sm:$0xff] }
 0x1d8   :  { %2911 = vmatprep.subr.bf16.mxu1 %v4595_v9  ;;  %v1919_v15 = vand.u32 4294901760, %v1918_v33  ;;  %v4596_v44 = vmov 0.0   ;;  %v1926_v16 = vand.u32 4294901760, %v1925_v63  ;;  %v1933_v3 = vand.u32 4294901760, %v1932_v50  ;;  %v3247_v33 = vld [vmem:[%s4515_s0] sm:$0xf] }
 0x1d9   :  { %3024 = vmatpush1.bf16.msra.mxu0 %v3023_v34  ;;  %v4262_v54 = vpack.c.bf16 %v4598_v21, %v4597_v37  ;;  %v4275_v46 = vpack.c.bf16 %v4602_v38, %v4601_v61  ;;  %v4607_v63 = vand.u32 4294901760, %v4100_v0  ;;  %v4608_v50 = vand.u32 4294901760, %v4119_v36  ;;  %v4612_v0 = vld [vmem:[#allocation9_spill] sm:$0xff] }
 0x1da   :  { %3061 = vmatprep.subr.bf16.mxu0 %v4595_v9  ;;  %v4236_v34 = vpack.c.bf16 %v1919_v15, %v1912_v52  ;;  %v4255_v39 = vpack.c.bf16 %v1933_v3, %v1926_v16  ;;  %v4290_v52 = vpack.c.bf16 %v4605_v48, %v4604_v45  ;;  %v4606_v15 = vld [vmem:[#allocation7_spill] sm:$0xff]  ;;  %v4610_v3 = vand.u32 4294901760, %v4131_v12  ;;  %v4617_v45 = vld [vmem:[#allocation13_spill] sm:$0xff] }
 0x1db   :  { %2913 = vmatpush1.bf16.msra.mxu1 %v2912_v32  ;;  %v4600_v32 = vand.u32 4294901760, %v3965_v41  ;;  %v4282_v41 = vand.u32 4294901760, %v3247_v33  ;;  %v4303_v30 = vpack.c.bf16 %v4608_v50, %v4607_v63  ;;  %v4611_v37 = vand.u32 4294901760, %v4133_v43  ;;  %v4614_v43 = vld [vmem:[#allocation10_spill] sm:$0xff] }
 0x1dc   :  { %1631 = vmatmul.mubr.f32.vlgmr.msra.gmra.mrb[4].mxu0 %v3954_v62  ;;  %2914 = vmatprep.subr.bf16.mxu1 %v4595_v9  ;;  %v4613_v12 = vand.u32 4294901760, %v4166_v55  ;;  %v3110_v38 = vpack.c.bf16 %v4007_v7, %v3999_v56  ;;  %v3116_v55 = vpack.c.bf16 %v4055_v25, %v4050_v8  ;;  %v3119_v48 = vpack.c.bf16 %v4095_v2, %v4077_v35  ;;  %v4618_v63 = vld [vmem:[#allocation14_spill] sm:$0xff] }
 0x1dd   :  { %3063 = vmatpush3.bf16.msra.mxu0 %v4229_v20  ;;  %2571 = vmatprep.mubr.msk.f32.mxu0 %vm3283_vm0, %v4596_v44  ;;  %v4314_v21 = vpack.c.bf16 %v4611_v37, %v4610_v3  ;;  %v3122_v50 = vpack.c.bf16 %v4117_v59, %v4112_v18  ;;  %v4619_v3 = vld [vmem:[#allocation15_spill] sm:$0xff]  ;;  %v3125_v37 = vpack.c.bf16 %v4155_v17, %v4146_v26 }
 0x1de   :  { %3064 = vmatprep.subr.bf16.mxu0 %v4595_v9 }
 0x1df   :  { %2916 = vmatpush1.bf16.msra.mxu1 %v2915_v19  ;;  %v4296_v19 = vsub.f32 %v3247_v33, %v4282_v41  ;;  %v4615_v33 = vld [vmem:[#allocation11_spill] sm:$0xff] }
 0x1e0   :  { %2953 = vmatprep.subr.bf16.mxu1 %v4595_v9 }
 0x1e1   :  { %3066 = vmatpush3.bf16.msra.mxu0 %v4249_v23  ;;  %v1815_v16 = vand.u32 4294901760, %v4296_v19 }
 0x1e2   :  { %1265 = vmatmul.mubr.f32.vlgmr.msra.gmra.mrb[2].mxu1 %v3954_v62  ;;  %3067 = vmatprep.subr.bf16.mxu0 %v4595_v9 }
 0x1e3   :  { %2955 = vmatpush1.bf16.msra.mxu1 %v4599_v4  ;;  %1483 = vmatprep.mubr.f32.mxu1 %v4600_v32  ;;  %v1816_v36 = vsub.f32 %v4296_v19, %v1815_v16  ;;  %v4327_v32 = vpack.c.bf16 %v4613_v12, %v1775_v60  ;;  %v3113_v60 = vpack.c.bf16 %v4032_v11, %v4025_v29 }
 0x1e4   :  { %2956 = vmatprep.subr.bf16.mxu1 %v4595_v9  ;;  %v3128_v12 = vpack.c.bf16 %v4182_v22, %v4177_v24 }
 0x1e5   :  { %3069 = vmatpush3.bf16.msra.mxu0 %v4262_v54  ;;  %v1817_v61 = vand.u32 4294901760, %v1816_v36  ;;  %v4620_v36 = vld [vmem:[#allocation16_spill] sm:$0xff] }
 0x1e6   :  { %3070 = vmatprep.subr.bf16.mxu0 %v4595_v9 }
 0x1e7   :  { %2958 = vmatpush1.bf16.msra.mxu1 %v4603_v31 }
 0x1e8   :  { %2959 = vmatprep.subr.bf16.mxu1 %v4595_v9 }
 0x1e9   :  { %3072 = vmatpush3.bf16.msra.mxu0 %v4275_v46 }
 0x1ea   :  { %3073 = vmatprep.subr.bf16.mxu0 %v4595_v9 }
 0x1eb   :  { %2961 = vmatpush1.bf16.msra.mxu1 %v4606_v15 }
 0x1ec   :  { %2962 = vmatprep.subr.bf16.mxu1 %v4595_v9 }
 0x1ed   :  { %3075 = vmatpush3.bf16.msra.mxu0 %v4290_v52 }
 0x1ee   :  { %3076 = vmatprep.subr.bf16.mxu0 %v4595_v9 }
 0x1ef   :  { %2964 = vmatpush1.bf16.msra.mxu1 %v4609_v27 }
 0x1f0   :  { %2965 = vmatprep.subr.bf16.mxu1 %v4595_v9 }
 0x1f1   :  { %3078 = vmatpush3.bf16.msra.mxu0 %v4303_v30 }
 0x1f2   :  { %3079 = vmatprep.subr.bf16.mxu0 %v4595_v9 }
 0x1f3   :  { %2967 = vmatpush1.bf16.msra.mxu1 %v4612_v0 }
 0x1f4   :  { %2968 = vmatprep.subr.bf16.mxu1 %v4595_v9 }
 0x1f5   :  { %3081 = vmatpush3.bf16.msra.mxu0 %v4314_v21 }
 0x1f6   :  { %3082 = vmatprep.subr.bf16.mxu0 %v4595_v9 }
 0x1f7   :  { %2970 = vmatpush1.bf16.msra.mxu1 %v4614_v43 }
 0x1f8   :  { %2971 = vmatprep.subr.bf16.mxu1 %v4595_v9 }
 0x1f9   :  { %3084 = vmatpush3.bf16.msra.mxu0 %v4327_v32 }
 0x1fa   :  { %3109 = vmatprep.subr.bf16.mxu0 %v4595_v9 }
 0x1fb   :  { %2973 = vmatpush1.bf16.msra.mxu1 %v4615_v33 }
 0x1fc   :  { %2974 = vmatprep.subr.bf16.mxu1 %v4595_v9  ;;  %2572 = vmatmul.mubr.f32.vlgmr.msra.gmra.mrb[6].mxu0 %v1817_v61  ;;  %v4621_v61 = vand.u32 4294901760, %v3958_v57  ;;  %v4622_v57 = vand.u32 4294901760, %v3999_v56  ;;  %v4626_v56 = vand.u32 4294901760, %v4050_v8  ;;  %v4630_v8 = vand.u32 4294901760, %v4112_v18 }
 0x1fd   :  { %3111 = vmatpush3.bf16.msra.mxu0 %v3110_v38  ;;  %2641 = vmatprep.mubr.msk.f32.mxu0 %vm3283_vm0, %v4596_v44  ;;  %v3131_v38 = vpack.c.bf16 %v4211_v5, %v4206_v42  ;;  %v3176_v18 = vpack.c.bf16 %v1917_v6, %v1910_v53 }
 0x1fe   :  { %3112 = vmatprep.subr.bf16.mxu0 %v4595_v9 }
 0x1ff   :  { %2976 = vmatpush1.bf16.msra.mxu1 %v4616_v51 }
 0x200   :  { %2977 = vmatprep.subr.bf16.mxu1 %v4595_v9 }
 0x201   :  { %3114 = vmatpush3.bf16.msra.mxu0 %v3113_v60  ;;  %v4623_v60 = vand.u32 4294901760, %v4007_v7  ;;  %v4627_v7 = vand.u32 4294901760, %v4055_v25  ;;  %v4631_v25 = vand.u32 4294901760, %v4117_v59  ;;  %v3179_v59 = vpack.c.bf16 %v1931_v49, %v1924_v1 }
 0x202   :  { %3115 = vmatprep.subr.bf16.mxu0 %v4595_v9 }
 0x203   :  { %2979 = vmatpush1.bf16.msra.mxu1 %v4617_v45 }
 0x204   :  { %2980 = vmatprep.subr.bf16.mxu1 %v4595_v9 }
 0x205   :  { %3117 = vmatpush3.bf16.msra.mxu0 %v3116_v55 }
 0x206   :  { %3118 = vmatprep.subr.bf16.mxu0 %v4595_v9 }
 0x207   :  { %2982 = vmatpush1.bf16.msra.mxu1 %v4618_v63 }
 0x208   :  { %2983 = vmatprep.subr.bf16.mxu1 %v4595_v9 }
 0x209   :  { %3120 = vmatpush3.bf16.msra.mxu0 %v3119_v48 }
 0x20a   :  { %3121 = vmatprep.subr.bf16.mxu0 %v4595_v9 }
 0x20b   :  { %2985 = vmatpush1.bf16.msra.mxu1 %v4619_v3 }
 0x20c   :  { %2986 = vmatprep.subr.bf16.mxu1 %v4595_v9 }
 0x20d   :  { %3123 = vmatpush3.bf16.msra.mxu0 %v3122_v50 }
 0x20e   :  { %3124 = vmatprep.subr.bf16.mxu0 %v4595_v9 }
 0x20f   :  { %2988 = vmatpush1.bf16.msra.mxu1 %v4620_v36 }
 0x210   :  { %3025 = vmatprep.subr.bf16.mxu1 %v4595_v9 }
 0x211   :  { %3126 = vmatpush3.bf16.msra.mxu0 %v3125_v37 }
 0x212   :  { %1487 = vmatmul.mubr.f32.vlgmr.msra.gmra.mrb[4].mxu1 %v4621_v61  ;;  %3127 = vmatprep.subr.bf16.mxu0 %v4595_v9 }
 0x213   :  { %3027 = vmatpush1.bf16.msra.mxu1 %v4599_v4  ;;  %1725 = vmatprep.mubr.f32.mxu1 %v3961_v10  ;;  %v3158_v4 = vpack.c.bf16 %v4623_v60, %v4622_v57  ;;  %v4624_v10 = vand.u32 4294901760, %v4025_v29  ;;  %v4628_v29 = vand.u32 4294901760, %v4077_v35  ;;  %v4632_v35 = vand.u32 4294901760, %v4146_v26 }
 0x214   :  { %3028 = vmatprep.subr.bf16.mxu1 %v4595_v9 }
 0x215   :  { %3129 = vmatpush3.bf16.msra.mxu0 %v3128_v12 }
 0x216   :  { %3130 = vmatprep.subr.bf16.mxu0 %v4595_v9 }
 0x217   :  { %3030 = vmatpush1.bf16.msra.mxu1 %v4603_v31  ;;  %v4625_v31 = vand.u32 4294901760, %v4032_v11  ;;  %v4629_v11 = vand.u32 4294901760, %v4095_v2  ;;  %v4633_v2 = vand.u32 4294901760, %v4155_v17 }
 0x218   :  { %3031 = vmatprep.subr.bf16.mxu1 %v4595_v9 }
 0x219   :  { %3132 = vmatpush3.bf16.msra.mxu0 %v3131_v38  ;;  %v3161_v55 = vpack.c.bf16 %v4625_v31, %v4624_v10 }
 0x21a   :  { %3157 = vmatprep.subr.bf16.mxu0 %v4595_v9 }
 0x21b   :  { %3033 = vmatpush1.bf16.msra.mxu1 %v4606_v15  ;;  %v3164_v15 = vpack.c.bf16 %v4627_v7, %v4626_v56 }
 0x21c   :  { %3034 = vmatprep.subr.bf16.mxu1 %v4595_v9  ;;  %2642 = vmatmul.mubr.f32.vlgmr.msra.gmra.mrb[8].mxu0 %v4296_v19 }
 0x21d   :  { %3159 = vmatpush3.bf16.msra.mxu0 %v3158_v4  ;;  %2711 = vmatprep.mubr.msk.f32.mxu0 %vm3283_vm0, %v4596_v44 }
 0x21e   :  { %3160 = vmatprep.subr.bf16.mxu0 %v4595_v9 }
 0x21f   :  { %3036 = vmatpush1.bf16.msra.mxu1 %v4609_v27  ;;  %v3167_v27 = vpack.c.bf16 %v4629_v11, %v4628_v29 }
 0x220   :  { %3037 = vmatprep.subr.bf16.mxu1 %v4595_v9 }
 0x221   :  { %3162 = vmatpush3.bf16.msra.mxu0 %v3161_v55 }
 0x222   :  { %3163 = vmatprep.subr.bf16.mxu0 %v4595_v9 }
 0x223   :  { %3039 = vmatpush1.bf16.msra.mxu1 %v4612_v0  ;;  %v3170_v0 = vpack.c.bf16 %v4631_v25, %v4630_v8  ;;  %v2435_v25 = vld [vmem:[%s4521_s6] ss:$0 sm:$0xff] }
 0x224   :  { %3040 = vmatprep.subr.bf16.mxu1 %v4595_v9 }
 0x225   :  { %3165 = vmatpush3.bf16.msra.mxu0 %v3164_v15 }
 0x226   :  { %3166 = vmatprep.subr.bf16.mxu0 %v4595_v9 }
 0x227   :  { %3042 = vmatpush1.bf16.msra.mxu1 %v4614_v43  ;;  %v3173_v43 = vpack.c.bf16 %v4633_v2, %v4632_v35  ;;  %v2436_v35 = vld [vmem:[%s4522_s7] ss:$0 sm:$0xff] }
 0x228   :  { %3043 = vmatprep.subr.bf16.mxu1 %v4595_v9 }
 0x229   :  { %3168 = vmatpush3.bf16.msra.mxu0 %v3167_v27 }
 0x22a   :  { %3169 = vmatprep.subr.bf16.mxu0 %v4595_v9 }
 0x22b   :  { %3045 = vmatpush1.bf16.msra.mxu1 %v4615_v33 }
 0x22c   :  { %3046 = vmatprep.subr.bf16.mxu1 %v4595_v9 }
 0x22d   :  { %3171 = vmatpush3.bf16.msra.mxu0 %v3170_v0 }
 0x22e   :  { %3172 = vmatprep.subr.bf16.mxu0 %v4595_v9 }
 0x22f   :  { %3048 = vmatpush1.bf16.msra.mxu1 %v4616_v51  ;;  %v2434_v51 = vld [vmem:[%s4520_s5] ss:$0 sm:$0xff] }
 0x230   :  { %3049 = vmatprep.subr.bf16.mxu1 %v4595_v9 }
 0x231   :  { %3174 = vmatpush3.bf16.msra.mxu0 %v3173_v43 }
 0x232   :  { %3175 = vmatprep.subr.bf16.mxu0 %v4595_v9 }
 0x233   :  { %3051 = vmatpush1.bf16.msra.mxu1 %v4617_v45 }
 0x234   :  { %3052 = vmatprep.subr.bf16.mxu1 %v4595_v9 }
 0x235   :  { %3177 = vmatpush3.bf16.msra.mxu0 %v3176_v18 }
 0x236   :  { %3178 = vmatprep.subr.bf16.mxu0 %v4595_v9 }
 0x237   :  { %3054 = vmatpush1.bf16.msra.mxu1 %v4618_v63 }
 0x238   :  { %3055 = vmatprep.subr.bf16.mxu1 %v4595_v9 }
 0x239   :  { %3180 = vmatpush3.bf16.msra.mxu0 %v3179_v59 }
 0x23b   :  { %3057 = vmatpush1.bf16.msra.mxu1 %v4619_v3 }
 0x23c   :  { %3058 = vmatprep.subr.bf16.mxu1 %v4595_v9  ;;  %2712 = vmatmul.mubr.f32.vlgmr.msra.gmra.mrb[10].mxu0 %v4282_v41 }
 0x23f   :  { %3060 = vmatpush1.bf16.msra.mxu1 %v4620_v36 }
 0x240   :  { %3085 = vmatprep.subr.bf16.mxu1 %v4595_v9 }
 0x242   :  { %1727 = vmatmul.mubr.f32.vlgmr.msra.gmra.mrb[6].mxu1 %v3954_v62 }
 0x243   :  { %3087 = vmatpush3.bf16.msra.mxu1 %v4079_v40  ;;  %2606 = vmatprep.mubr.msk.f32.mxu1 %vm3283_vm0, %v4596_v44 }
 0x244   :  { %3088 = vmatprep.subr.bf16.mxu1 %v4595_v9 }
 0x247   :  { %3090 = vmatpush3.bf16.msra.mxu1 %v4122_v58 }
 0x248   :  { %3091 = vmatprep.subr.bf16.mxu1 %v4595_v9 }
 0x24b   :  { %3093 = vmatpush3.bf16.msra.mxu1 %v4135_v14 }
 0x24c   :  { %3094 = vmatprep.subr.bf16.mxu1 %v4595_v9 }
 0x24f   :  { %3096 = vmatpush3.bf16.msra.mxu1 %v4184_v13 }
 0x250   :  { %3097 = vmatprep.subr.bf16.mxu1 %v4595_v9 }
 0x253   :  { %3099 = vmatpush3.bf16.msra.mxu1 %v4195_v47 }
 0x254   :  { %3100 = vmatprep.subr.bf16.mxu1 %v4595_v9 }
 0x257   :  { %3102 = vmatpush3.bf16.msra.mxu1 %v4217_v28 }
 0x258   :  { %3103 = vmatprep.subr.bf16.mxu1 %v4595_v9 }
 0x25b   :  { %3105 = vmatpush3.bf16.msra.mxu1 %v4236_v34 }
 0x25c   :  { %3106 = vmatprep.subr.bf16.mxu1 %v4595_v9 }
 0x25f   :  { %3108 = vmatpush3.bf16.msra.mxu1 %v4255_v39 }
 0x260   :  { %3133 = vmatprep.subr.bf16.mxu1 %v4595_v9 }
 0x262   :  { %2607 = vmatmul.mubr.f32.vlgmr.msra.gmra.mrb[8].mxu1 %v4282_v41 }
 0x263   :  { %3135 = vmatpush3.bf16.msra.mxu1 %v4229_v20  ;;  %2676 = vmatprep.mubr.msk.f32.mxu1 %vm3283_vm0, %v4596_v44 }
 0x264   :  { %3136 = vmatprep.subr.bf16.mxu1 %v4595_v9 }
 0x267   :  { %3138 = vmatpush3.bf16.msra.mxu1 %v4249_v23 }
 0x268   :  { %3139 = vmatprep.subr.bf16.mxu1 %v4595_v9 }
 0x26b   :  { %3141 = vmatpush3.bf16.msra.mxu1 %v4262_v54 }
 0x26c   :  { %3142 = vmatprep.subr.bf16.mxu1 %v4595_v9 }
 0x26f   :  { %3144 = vmatpush3.bf16.msra.mxu1 %v4275_v46 }
 0x270   :  { %3145 = vmatprep.subr.bf16.mxu1 %v4595_v9 }
 0x273   :  { %3147 = vmatpush3.bf16.msra.mxu1 %v4290_v52 }
 0x274   :  { %3148 = vmatprep.subr.bf16.mxu1 %v4595_v9 }
 0x277   :  { %3150 = vmatpush3.bf16.msra.mxu1 %v4303_v30 }
 0x278   :  { %3151 = vmatprep.subr.bf16.mxu1 %v4595_v9 }
 0x27b   :  { %3153 = vmatpush3.bf16.msra.mxu1 %v4314_v21 }
 0x27c   :  { %3154 = vmatprep.subr.bf16.mxu1 %v4595_v9 }
 0x27f   :  { %3156 = vmatpush3.bf16.msra.mxu1 %v4327_v32  ;;  %v1388_v62 = vpop.f32.mrb[2].mxu0 }
 0x280   :  { %v1390_v40 = vpop.f32.mrb[3].mxu0  ;;  %3181 = vmatprep.subr.bf16.mxu1 %v4595_v9 }
 0x282   :  { %2677 = vmatmul.mubr.f32.vlgmr.msra.gmra.mrb[10].mxu1 %v1815_v16 }
 0x283   :  { %3183 = vmatpush3.bf16.msra.mxu1 %v4229_v20  ;;  %2746 = vmatprep.mubr.msk.f32.mxu1 %vm3283_vm0, %v4596_v44 }
 0x284   :  { %3184 = vmatprep.subr.bf16.mxu1 %v4595_v9 }
 0x285   :  { %v1074_v58 = vpop.f32.mrb[0].mxu1 }
 0x286   :  { %v1076_v14 = vpop.f32.mrb[1].mxu1 }
 0x287   :  { %3186 = vmatpush3.bf16.msra.mxu1 %v4249_v23 }
 0x288   :  { %3187 = vmatprep.subr.bf16.mxu1 %v4595_v9 }
 0x28b   :  { %3189 = vmatpush3.bf16.msra.mxu1 %v4262_v54 }
 0x28c   :  { %3190 = vmatprep.subr.bf16.mxu1 %v4595_v9 }
 0x28f   :  { %3192 = vmatpush3.bf16.msra.mxu1 %v4275_v46 }
 0x290   :  { %3193 = vmatprep.subr.bf16.mxu1 %v4595_v9 }
 0x293   :  { %3195 = vmatpush3.bf16.msra.mxu1 %v4290_v52 }
 0x294   :  { %3196 = vmatprep.subr.bf16.mxu1 %v4595_v9 }
 0x297   :  { %3198 = vmatpush3.bf16.msra.mxu1 %v4303_v30 }
 0x298   :  { %3199 = vmatprep.subr.bf16.mxu1 %v4595_v9 }
 0x29b   :  { %3201 = vmatpush3.bf16.msra.mxu1 %v4314_v21 }
 0x29c   :  { %3202 = vmatprep.subr.bf16.mxu1 %v4595_v9 }
 0x29f   :  { %3204 = vmatpush3.bf16.msra.mxu1 %v4327_v32 }
 0x2a2   :  { %2747 = vmatmul.mubr.f32.vlgmr.msra.gmra.mrb[12].mxu1 %v4282_v41 }
 0x2af   :  { %v1632_v26 = vpop.f32.mrb[4].mxu0 }
 0x2b0   :  { %v1634_v17 = vpop.f32.mrb[5].mxu0 }
 0x2b5   :  { %v1266_v28 = vpop.f32.mrb[2].mxu1 }
 0x2b6   :  { %v1267_v24 = vadd.f32 %v1266_v28, %v1074_v58  ;;  %v1268_v22 = vpop.f32.mrb[3].mxu1 }
 0x2b8   :  { %v1389_v13 = vadd.f32 %v1388_v62, %v1267_v24 }
 0x2cf   :  { %v1819_v6 = vpop.f32.mrb[6].mxu0 }
 0x2d0   :  { %v2573_v47 = vpop.f32.mrb[7].mxu0 }
 0x2e5   :  { %v1488_v42 = vpop.f32.mrb[4].mxu1 }
 0x2e6   :  { %v1489_v5 = vadd.f32 %v1488_v42, %v1389_v13  ;;  %v1490_v53 = vpop.f32.mrb[5].mxu1 }
 0x2e8   :  { %v1633_v20 = vadd.f32 %v1632_v26, %v1489_v5 }
 0x2ef   :  { %v2074_v1 = vpop.f32.mrb[8].mxu0 }
 0x2f0   :  { %v2643_v49 = vpop.f32.mrb[9].mxu0 }
 0x30f   :  { %v2282_v34 = vpop.f32.mrb[10].mxu0 }
 0x310   :  { %v2713_v9 = vpop.f32.mrb[11].mxu0 }
 0x315   :  { %v1728_v23 = vpop.f32.mrb[6].mxu1 }
 0x316   :  { %v1729_v44 = vadd.f32 %v1728_v23, %v1633_v20  ;;  %v1730_v39 = vpop.f32.mrb[7].mxu1 }
 0x318   :  { %v1820_v54 = vadd.f32 %v1819_v6, %v1729_v44 }
 0x335   :  { %v1970_v46 = vpop.f32.mrb[8].mxu1 }
 0x336   :  { %v1971_v41 = vadd.f32 %v1970_v46, %v1820_v54  ;;  %v2608_v52 = vpop.f32.mrb[9].mxu1 }
 0x338   :  { %v2075_v19 = vadd.f32 %v2074_v1, %v1971_v41 }
 0x355   :  { %v2163_v30 = vpop.f32.mrb[10].mxu1 }
 0x356   :  { %v2164_v16 = vadd.f32 %v2163_v30, %v2075_v19  ;;  %v2678_v21 = vpop.f32.mrb[11].mxu1 }
 0x358   :  { %v2283_v32 = vadd.f32 %v2282_v34, %v2164_v16 }
 0x375   :  { %v2369_v33 = vpop.f32.mrb[12].mxu1 }
 0x376   :  { %v2370_v45 = vadd.f32 %v2369_v33, %v2283_v32  ;;  %v2748_v48 = vpop.f32.mrb[13].mxu1 }
 0x378   :  { %v2380_v63 = vadd.f32 %v2434_v51, %v2370_v45 }
 0x37a   :  { %v2382_v50 = vsel %vm2381_vm12, %v2380_v63, 0.0 }
 0x37b   :  { %v2383_v3 = vrot.slane %v2382_v50, 4 }
 0x37d   :  { %v2384_v37 = vadd.f32 %v2383_v3, %v2382_v50 }
 0x37f   :  { %v2385_v36 = vrot.slane %v2384_v37, 2 }
 0x381   :  { %v2386_v12 = vadd.f32 %v2385_v36, %v2384_v37 }
 0x383   :  { %v2387_v61 = vrot.slane %v2386_v12, 1 }
 0x385   :  { %v2388_v38 = vadd.f32 %v2387_v61, %v2386_v12 }
 0x387   :  { %v2390_v57 = vmul.f32 0.25, %v2388_v38 }
 0x389   :  { %v2391_v60 = vsub.f32 %v2380_v63, %v2390_v57 }
 0x38b   :  { %v2392_v4 = vmul.f32 %v2391_v60, %v2391_v60 }
 0x38d   :  { %v2393_v10 = vsel %vm2381_vm12, %v2392_v4, 0.0 }
 0x38e   :  { %v2394_v31 = vrot.slane %v2393_v10, 4 }
 0x390   :  { %v2395_v55 = vadd.f32 %v2394_v31, %v2393_v10 }
 0x392   :  { %v2396_v56 = vrot.slane %v2395_v55, 2 }
 0x394   :  { %v2397_v7 = vadd.f32 %v2396_v56, %v2395_v55 }
 0x396   :  { %v2398_v15 = vrot.slane %v2397_v7, 1 }
 0x398   :  { %v2399_v29 = vadd.f32 %v2398_v15, %v2397_v7 }
 0x39a   :  { %v2400_v11 = vmul.f32 0.25, %v2399_v29 }
 0x39c   :  { %v2401_v27 = vadd.f32 1e-05, %v2400_v11 }
 0x39e   :  { %3245 = vrsqrt.f32 %v2401_v27 }
 0x3a8   :  { %v3246_v8 = vpop.eup %3245 }
 0x3a9   :  { %v2403_v0 = vmul.f32 %v3246_v8, %v2391_v60 }
 0x3ab   :  { %v2411_v2 = vmul.f32 %v2435_v25, %v2403_v0 }
 0x3ad   :  { %v2419_v43 = vadd.f32 %v2436_v35, %v2411_v2 }
 0x3af   :  { %2420 = vst.msk [vmem:[%s4523_s8] sm:$0xf] %vm2381_vm12, %v2419_v43 }
 0x3b0   :  { %2425 = vsyncpa [#allocation3], 1 }

</bundles_post_ra>
